<compile_context>
chip_gen: v5e
topology: v5e:2x2
jax: 0.10.0
libtpu: 0.0.40
codegen_flags: <defaults>
</compile_context>

<pallas_src>
import functools
import math

import jax
import jax.numpy as jnp
from jax.experimental import pallas as pl
from jax.experimental.pallas import tpu as pltpu


# ----------------------------------------------------------------------------
# Pallas kernel: full transformer-encoder stack + mean pooling, fused.
# ----------------------------------------------------------------------------
def _encoder_stack_kernel(x_ref, wqkv_ref, bqkv_ref, wo_ref, bo_ref,
                          g1_ref, be1_ref, w1_ref, b1_ref, w2_ref, b2_ref,
                          g2_ref, be2_ref, o_ref, *, num_heads, eps):
    cd = jnp.bfloat16                          # MXU input dtype (f32 accumulation)
    TN, S, E = x_ref.shape
    L = wqkv_ref.shape[0]
    hd = E // num_heads
    rows = TN * S

    # Residual stream stays f32; only MXU operands are cast to bf16.
    x2d = x_ref[...].reshape(rows, E).astype(jnp.float32)

    for l in range(L):                         # static unroll over layers
        wqkv = wqkv_ref[l]                     # (E, 3E)  bf16, Q cols pre-scaled by 1/sqrt(hd)
        wo = wo_ref[l]                         # (E, E)   bf16
        w1 = w1_ref[l]                         # (E, H)   bf16
        w2 = w2_ref[l]                         # (H, E)   bf16

        # ---- self-attention (multi-head, no mask) ---------------------------
        qkv = jnp.dot(x2d.astype(cd), wqkv,
                      preferred_element_type=jnp.float32) + bqkv_ref[l]
        q = qkv[:, :E].astype(cd)              # already scaled (folded into weights)
        k = qkv[:, E:2 * E].astype(cd)
        v = qkv[:, 2 * E:].astype(cd)

        # Per-head scores / softmax / PV batched over TN sequences (3-D einsum,
        # single leading batch dim), then one lane-concat and ONE E-contraction
        # output projection instead of num_heads hd-contraction matmuls.
        ctx_heads = []
        for h in range(num_heads):             # static unroll; small head count
            lo = h * hd
            qh = q[:, lo:lo + hd].reshape(TN, S, hd)
            kh = k[:, lo:lo + hd].reshape(TN, S, hd)
            vh = v[:, lo:lo + hd].reshape(TN, S, hd)
            sc = jnp.einsum('bqd,bkd->bqk', qh, kh,
                            preferred_element_type=jnp.float32)       # (TN, S, S)
            sc = sc - jnp.max(sc, axis=-1, keepdims=True)
            p = jnp.exp(sc)
            p = p * pl.reciprocal(jnp.sum(p, axis=-1, keepdims=True), approx=False)
            ctx = jnp.einsum('bqk,bkd->bqd', p.astype(cd), vh,
                             preferred_element_type=jnp.float32)      # (TN, S, hd)
            ctx_heads.append(ctx.reshape(rows, hd))
        ctx_all = ctx_heads[0] if num_heads == 1 else jnp.concatenate(ctx_heads, axis=-1)
        attn = jnp.dot(ctx_all.astype(cd), wo,
                       preferred_element_type=jnp.float32) + bo_ref[l]

        # residual + LayerNorm 1 (post-norm, PyTorch default norm_first=False)
        x2d = x2d + attn
        mu = jnp.mean(x2d, axis=-1, keepdims=True)
        var = jnp.mean(jnp.square(x2d - mu), axis=-1, keepdims=True)
        x2d = (x2d - mu) * jax.lax.rsqrt(var + eps) * g1_ref[l] + be1_ref[l]

        # ---- feed-forward ----------------------------------------------------
        h1 = jnp.dot(x2d.astype(cd), w1,
                     preferred_element_type=jnp.float32) + b1_ref[l]
        h1 = jnp.maximum(h1, 0.0)                                     # ReLU (default)
        ff = jnp.dot(h1.astype(cd), w2,
                     preferred_element_type=jnp.float32) + b2_ref[l]

        # residual + LayerNorm 2
        x2d = x2d + ff
        mu = jnp.mean(x2d, axis=-1, keepdims=True)
        var = jnp.mean(jnp.square(x2d - mu), axis=-1, keepdims=True)
        x2d = (x2d - mu) * jax.lax.rsqrt(var + eps) * g2_ref[l] + be2_ref[l]

    # ---- fused mean-over-tokens pooling (saves a full HBM round trip) --------
    o_ref[...] = jnp.mean(x2d.reshape(TN, S, E), axis=1, keepdims=True)


# ----------------------------------------------------------------------------
# Chip / VMEM helpers
# ----------------------------------------------------------------------------
def _vmem_capacity_bytes():
    try:
        info = pltpu.get_tpu_info()
        cap = getattr(info, "vmem_capacity_bytes", None)
        if cap:
            return int(cap)
    except Exception:
        pass
    return 64 * 1024 * 1024          # conservative (v7x) fallback


def _vmem_bytes_estimate(TN, S, E, H, L):
    rows = TN * S
    w = 2 * L * (3 * E * E + E * E + 2 * E * H)      # bf16 weights, single-buffered
    b = 4 * L * (9 * E + H)                          # f32 biases + LN params
    io = 2 * (2 * rows * E) + 2 * (4 * TN * E)       # bf16 input (x2 bufs) + f32 output (x2)
    act = (4 * rows * 3 * E                          # f32 qkv
           + 6 * rows * E                            # bf16 q/k/v
           + 8 * TN * S * S                          # f32 scores + probs (one head live)
           + 20 * rows * E                           # residual / attn / ff / ctx temporaries
           + 6 * rows * H)                           # FFN hidden (f32 + bf16)
    return w + b + io + act


def _pick_tn(N, S, E, H, L, vmem_cap, target_rows):
    """Sequences per grid step: aim for >=target_rows MXU rows, keep >=2 grid steps
    when possible (megacore sharding of the parallel axis), stay under the VMEM budget."""
    budget = int(0.7 * vmem_cap)
    divisors = sorted(d for d in range(1, N + 1) if N % d == 0)
    want = max(1, target_rows // max(S, 1))
    cands = ([d for d in divisors if d <= want and N // d >= 2]
             or [d for d in divisors if d <= want]
             or [1])
    for d in sorted(cands, reverse=True):
        if _vmem_bytes_estimate(d, S, E, H, L) <= budget:
            return d
    for d in divisors:
        if _vmem_bytes_estimate(d, S, E, H, L) <= budget:
            return d
    return 1


_HAS_BUFFERED = hasattr(pl, "Buffered")


def _const_spec(shape):
    """Grid-invariant (weights/biases): constant index_map + single pipeline buffer."""
    idx = lambda n: (0,) * len(shape)
    if _HAS_BUFFERED:
        try:
            return pl.BlockSpec(shape, idx, pipeline_mode=pl.Buffered(1))
        except TypeError:
            pass
    return pl.BlockSpec(shape, idx)


# ----------------------------------------------------------------------------
# Wrapper around pallas_call
# ----------------------------------------------------------------------------
def transformer_text_encoder(embedded_text, layer_params, num_heads, eps=1e-5):
    """Pallas equivalent of TransformerTextEncoder.forward."""
    B, D, M, W, E = embedded_text.shape
    assert E % num_heads == 0
    N, S = B * D, M * W
    L = len(layer_params)
    H = layer_params[0]["w1"].shape[1]
    hd = E // num_heads

    # bf16 input slab: halves the double-buffered input DMA / VMEM; the residual
    # stream is rebuilt in f32 inside the kernel.
    x = embedded_text.reshape(N, S, E).astype(jnp.bfloat16)

    # Stack per-layer parameters along a leading layer axis; weights in bf16 for the
    # MXU (and to halve HBM/VMEM bytes), biases + LayerNorm params stay f32.
    wdt, fdt = jnp.bfloat16, jnp.float32
    stk = lambda name, dt: jnp.stack([p[name] for p in layer_params]).astype(dt)

    # Fold the 1/sqrt(hd) attention scale into the Q columns (weight AND bias) before
    # the bf16 cast -- removes a rows*E VPU multiply per layer from the kernel.
    scale = 1.0 / math.sqrt(hd)
    wqkv_f32 = jnp.stack([p["wqkv"] for p in layer_params]).astype(fdt)
    bqkv_f32 = jnp.stack([p["bqkv"] for p in layer_params]).astype(fdt)
    wqkv_f32 = wqkv_f32.at[:, :, :E].multiply(scale)
    bqkv = bqkv_f32.at[:, :, :E].multiply(scale)
    wqkv = wqkv_f32.astype(wdt)

    wo, w1, w2 = stk("wo", wdt), stk("w1", wdt), stk("w2", wdt)
    bo, b1, b2 = stk("bo", fdt), stk("b1", fdt), stk("b2", fdt)
    g1, be1 = stk("g1", fdt), stk("be1", fdt)
    g2, be2 = stk("g2", fdt), stk("be2", fdt)

    # Chip-aware tiling: larger tiles where VMEM allows (v5e/v6e: 128 MiB), modest
    # on v7x (64 MiB) to preserve >=2 grid steps for 2-TensorCore sharding.
    vmem_cap = _vmem_capacity_bytes()
    target_rows = 512 if vmem_cap >= 100 * 1024 * 1024 else 256
    TN = _pick_tn(N, S, E, H, L, vmem_cap, target_rows)
    grid = (N // TN,)

    # Always set the scoped-VMEM limit: 2x margin over the estimate, never below the
    # generous 32 MiB floor, never above ~85% of physical VMEM (compiler headroom).
    est = _vmem_bytes_estimate(TN, S, E, H, L)
    vmem_limit = int(min(max(2 * est, 32 * 1024 * 1024), int(0.85 * vmem_cap)))

    kernel = functools.partial(_encoder_stack_kernel, num_heads=num_heads, eps=eps)
    out = pl.pallas_call(
        kernel,
        out_shape=jax.ShapeDtypeStruct((N, 1, E), jnp.float32),
        grid=grid,
        in_specs=[
            pl.BlockSpec((TN, S, E), lambda n: (n, 0, 0)),   # x block (TN sequences)
            _const_spec((L, E, 3 * E)),                      # wqkv (Q cols pre-scaled)
            _const_spec((L, 1, 3 * E)),                      # bqkv
            _const_spec((L, E, E)),                          # wo
            _const_spec((L, 1, E)),                          # bo
            _const_spec((L, 1, E)),                          # ln1 gamma
            _const_spec((L, 1, E)),                          # ln1 beta
            _const_spec((L, E, H)),                          # w1
            _const_spec((L, 1, H)),                          # b1
            _const_spec((L, H, E)),                          # w2
            _const_spec((L, 1, E)),                          # b2
            _const_spec((L, 1, E)),                          # ln2 gamma
            _const_spec((L, 1, E)),                          # ln2 beta
        ],
        out_specs=pl.BlockSpec((TN, 1, E), lambda n: (n, 0, 0)),
        compiler_params=pltpu.CompilerParams(
            dimension_semantics=("parallel",),
            vmem_limit_bytes=vmem_limit),
    )(x, wqkv, bqkv, wo, bo, g1, be1, w1, b1, w2, b2, g2, be2)

    return out[:, 0, :].reshape(B, D, E)


# ----------------------------------------------------------------------------
# Deterministic parameter init (shapes follow nn.TransformerEncoderLayer)
# ----------------------------------------------------------------------------
def init_params(key, num_layers, embedding_dim, hidden_dim):
    E, H = embedding_dim, hidden_dim
    params = []
    for _ in range(num_layers):
        key, *ks = jax.random.split(key, 5)
        wq_in = 0.02 * jax.random.normal(ks[0], (3 * E, E), jnp.float32)  # in_proj_weight
        wo = 0.02 * jax.random.normal(ks[1], (E, E), jnp.float32)         # out_proj.weight
        w1 = 0.02 * jax.random.normal(ks[2], (H, E), jnp.float32)         # linear1.weight
        w2 = 0.02 * jax.random.normal(ks[3], (E, H), jnp.float32)         # linear2.weight
        params.append(dict(
            wqkv=wq_in.T,                       # (E, 3E)  so kernel does x @ W
            bqkv=jnp.zeros((1, 3 * E), jnp.float32),
            wo=wo.T,                            # (E, E)
            bo=jnp.zeros((1, E), jnp.float32),
            g1=jnp.ones((1, E), jnp.float32),
            be1=jnp.zeros((1, E), jnp.float32),
            w1=w1.T,                            # (E, H)
            b1=jnp.zeros((1, H), jnp.float32),
            w2=w2.T,                            # (H, E)
            b2=jnp.zeros((1, E), jnp.float32),
            g2=jnp.ones((1, E), jnp.float32),
            be2=jnp.zeros((1, E), jnp.float32),
        ))
    return params


# ----------------------------------------------------------------------------
# Pure-JAX f32 reference (same math) for a sanity check
# ----------------------------------------------------------------------------
def _reference(embedded_text, layer_params, num_heads, eps=1e-5):
    B, D, M, W, E = embedded_text.shape
    N, S = B * D, M * W
    hd = E // num_heads
    x = embedded_text.reshape(N, S, E).astype(jnp.float32)
    for p in layer_params:
        qkv = x @ p["wqkv"] + p["bqkv"][0]
        q, k, v = qkv[..., :E], qkv[..., E:2 * E], qkv[..., 2 * E:]
        q = q.reshape(N, S, num_heads, hd).transpose(0, 2, 1, 3) / math.sqrt(hd)
        k = k.reshape(N, S, num_heads, hd).transpose(0, 2, 1, 3)
        v = v.reshape(N, S, num_heads, hd).transpose(0, 2, 1, 3)
        s = jnp.einsum("nhqd,nhkd->nhqk", q, k)
        pmat = jax.nn.softmax(s, axis=-1)
        attn = jnp.einsum("nhqk,nhkd->nhqd", pmat, v).transpose(0, 2, 1, 3).reshape(N, S, E)
        attn = attn @ p["wo"] + p["bo"][0]
        x = x + attn
        mu = x.mean(-1, keepdims=True)
        var = ((x - mu) ** 2).mean(-1, keepdims=True)
        x = (x - mu) / jnp.sqrt(var + eps) * p["g1"][0] + p["be1"][0]
        ff = jnp.maximum(x @ p["w1"] + p["b1"][0], 0.0) @ p["w2"] + p["b2"][0]
        x = x + ff
        mu = x.mean(-1, keepdims=True)
        var = ((x - mu) ** 2).mean(-1, keepdims=True)
        x = (x - mu) / jnp.sqrt(var + eps) * p["g2"][0] + p["be2"][0]
    return x.reshape(B, D, S, E).mean(axis=2)


# ----------------------------------------------------------------------------
if __name__ == "__main__":
    # small shapes consistent with the module's forward
    batch, num_days, num_messages, num_words = 2, 2, 2, 4
    embedding_dim, num_heads, num_layers, hidden_dim = 32, 4, 2, 64

    key = jax.random.PRNGKey(0)
    k_in, k_par = jax.random.split(key)
    embedded_text = jax.random.normal(
        k_in, (batch, num_days, num_messages, num_words, embedding_dim), jnp.float32)
    params = init_params(k_par, num_layers, embedding_dim, hidden_dim)

    out = transformer_text_encoder(embedded_text, params, num_heads)
    out = jax.block_until_ready(out)

    assert out.shape == (batch, num_days, embedding_dim)
    ref = _reference(embedded_text, params, num_heads)
    # bf16 MXU inputs / bf16 input slab vs f32 reference -> loosened tolerance
    assert jnp.allclose(out, ref, rtol=5e-2, atol=5e-2), "mismatch vs JAX reference"

    print("KERNEL_OK")
</pallas_src>

<mosaic_0001>
module attributes {stable_mosaic.version = 11 : i64} {
  func.func @_encoder_stack_kernel(%arg0: i32, %arg1: memref<2x8x32xbf16, #tpu.memory_space<vmem>>, %arg2: memref<2x32x96xbf16, #tpu.memory_space<vmem>>, %arg3: memref<2x1x96xf32, #tpu.memory_space<vmem>>, %arg4: memref<2x32x32xbf16, #tpu.memory_space<vmem>>, %arg5: memref<2x1x32xf32, #tpu.memory_space<vmem>>, %arg6: memref<2x1x32xf32, #tpu.memory_space<vmem>>, %arg7: memref<2x1x32xf32, #tpu.memory_space<vmem>>, %arg8: memref<2x32x64xbf16, #tpu.memory_space<vmem>>, %arg9: memref<2x1x64xf32, #tpu.memory_space<vmem>>, %arg10: memref<2x64x32xbf16, #tpu.memory_space<vmem>>, %arg11: memref<2x1x32xf32, #tpu.memory_space<vmem>>, %arg12: memref<2x1x32xf32, #tpu.memory_space<vmem>>, %arg13: memref<2x1x32xf32, #tpu.memory_space<vmem>>, %arg14: memref<2x1x32xf32, #tpu.memory_space<vmem>>) attributes {dimension_semantics = [#tpu.dimension_semantics<parallel>], iteration_bounds = array<i64: 2>, scalar_prefetch = 0 : i64, scratch_operands = 0 : i64, tpu.core_type = #tpu.core_type<tc>, window_params = [{transform_indices = @transform_0, window_bounds = array<i64: 2, 8, 32>}, {pipeline_mode = #tpu.pipeline_mode<synchronous>, transform_indices = @transform_1, window_bounds = array<i64: 2, 32, 96>}, {pipeline_mode = #tpu.pipeline_mode<synchronous>, transform_indices = @transform_2, window_bounds = array<i64: 2, 1, 96>}, {pipeline_mode = #tpu.pipeline_mode<synchronous>, transform_indices = @transform_3, window_bounds = array<i64: 2, 32, 32>}, {pipeline_mode = #tpu.pipeline_mode<synchronous>, transform_indices = @transform_4, window_bounds = array<i64: 2, 1, 32>}, {pipeline_mode = #tpu.pipeline_mode<synchronous>, transform_indices = @transform_5, window_bounds = array<i64: 2, 1, 32>}, {pipeline_mode = #tpu.pipeline_mode<synchronous>, transform_indices = @transform_6, window_bounds = array<i64: 2, 1, 32>}, {pipeline_mode = #tpu.pipeline_mode<synchronous>, transform_indices = @transform_7, window_bounds = array<i64: 2, 32, 64>}, {pipeline_mode = #tpu.pipeline_mode<synchronous>, transform_indices = @transform_8, window_bounds = array<i64: 2, 1, 64>}, {pipeline_mode = #tpu.pipeline_mode<synchronous>, transform_indices = @transform_9, window_bounds = array<i64: 2, 64, 32>}, {pipeline_mode = #tpu.pipeline_mode<synchronous>, transform_indices = @transform_10, window_bounds = array<i64: 2, 1, 32>}, {pipeline_mode = #tpu.pipeline_mode<synchronous>, transform_indices = @transform_11, window_bounds = array<i64: 2, 1, 32>}, {pipeline_mode = #tpu.pipeline_mode<synchronous>, transform_indices = @transform_12, window_bounds = array<i64: 2, 1, 32>}, {transform_indices = @transform_13, window_bounds = array<i64: 2, 1, 32>}]} {
    %c0 = arith.constant 0 : index
    %c0_0 = arith.constant 0 : index
    %c0_1 = arith.constant 0 : index
    %0 = vector.load %arg1[%c0, %c0_0, %c0_1] : memref<2x8x32xbf16, #tpu.memory_space<vmem>>, vector<2x8x32xbf16>
    %1 = vector.shape_cast %0 : vector<2x8x32xbf16> to vector<16x32xbf16>
    %2 = arith.extf %1 : vector<16x32xbf16> to vector<16x32xf32>
    %c0_2 = arith.constant 0 : index
    %c0_3 = arith.constant 0 : index
    %c0_4 = arith.constant 0 : index
    %3 = vector.load %arg2[%c0_2, %c0_3, %c0_4] : memref<2x32x96xbf16, #tpu.memory_space<vmem>>, vector<1x32x96xbf16>
    %4 = vector.shape_cast %3 : vector<1x32x96xbf16> to vector<32x96xbf16>
    %c0_5 = arith.constant 0 : index
    %c0_6 = arith.constant 0 : index
    %c0_7 = arith.constant 0 : index
    %5 = vector.load %arg4[%c0_5, %c0_6, %c0_7] : memref<2x32x32xbf16, #tpu.memory_space<vmem>>, vector<1x32x32xbf16>
    %6 = vector.shape_cast %5 : vector<1x32x32xbf16> to vector<32x32xbf16>
    %c0_8 = arith.constant 0 : index
    %c0_9 = arith.constant 0 : index
    %c0_10 = arith.constant 0 : index
    %7 = vector.load %arg8[%c0_8, %c0_9, %c0_10] : memref<2x32x64xbf16, #tpu.memory_space<vmem>>, vector<1x32x64xbf16>
    %8 = vector.shape_cast %7 : vector<1x32x64xbf16> to vector<32x64xbf16>
    %c0_11 = arith.constant 0 : index
    %c0_12 = arith.constant 0 : index
    %c0_13 = arith.constant 0 : index
    %9 = vector.load %arg10[%c0_11, %c0_12, %c0_13] : memref<2x64x32xbf16, #tpu.memory_space<vmem>>, vector<1x64x32xbf16>
    %10 = vector.shape_cast %9 : vector<1x64x32xbf16> to vector<64x32xbf16>
    %11 = arith.truncf %2 : vector<16x32xf32> to vector<16x32xbf16>
    %cst = arith.constant dense<0.000000e+00> : vector<16x96xf32>
    %12 = tpu.matmul %11, %4, %cst {dimension_numbers = #tpu.dot_dimension_numbers<[1], [0], [0], [1], [0, 0, 1, 1], [], []>} : vector<16x32xbf16>, vector<32x96xbf16>, vector<16x96xf32> -> vector<16x96xf32>
    %c0_14 = arith.constant 0 : index
    %c0_15 = arith.constant 0 : index
    %c0_16 = arith.constant 0 : index
    %13 = vector.load %arg3[%c0_14, %c0_15, %c0_16] : memref<2x1x96xf32, #tpu.memory_space<vmem>>, vector<1x1x96xf32>
    %14 = vector.shape_cast %13 : vector<1x1x96xf32> to vector<1x96xf32>
    %15 = vector.broadcast %14 : vector<1x96xf32> to vector<16x96xf32>
    %16 = arith.addf %12, %15 : vector<16x96xf32>
    %17 = vector.extract_strided_slice %16 {offsets = [0, 0], sizes = [16, 32], strides = [1, 1]} : vector<16x96xf32> to vector<16x32xf32>
    %18 = arith.truncf %17 : vector<16x32xf32> to vector<16x32xbf16>
    %19 = vector.extract_strided_slice %16 {offsets = [0, 32], sizes = [16, 32], strides = [1, 1]} : vector<16x96xf32> to vector<16x32xf32>
    %20 = arith.truncf %19 : vector<16x32xf32> to vector<16x32xbf16>
    %21 = vector.extract_strided_slice %16 {offsets = [0, 64], sizes = [16, 32], strides = [1, 1]} : vector<16x96xf32> to vector<16x32xf32>
    %22 = arith.truncf %21 : vector<16x32xf32> to vector<16x32xbf16>
    %23 = vector.extract_strided_slice %18 {offsets = [0, 0], sizes = [16, 8], strides = [1, 1]} : vector<16x32xbf16> to vector<16x8xbf16>
    %24 = vector.shape_cast %23 : vector<16x8xbf16> to vector<2x8x8xbf16>
    %25 = vector.extract_strided_slice %20 {offsets = [0, 0], sizes = [16, 8], strides = [1, 1]} : vector<16x32xbf16> to vector<16x8xbf16>
    %26 = vector.shape_cast %25 : vector<16x8xbf16> to vector<2x8x8xbf16>
    %27 = vector.extract_strided_slice %22 {offsets = [0, 0], sizes = [16, 8], strides = [1, 1]} : vector<16x32xbf16> to vector<16x8xbf16>
    %28 = vector.shape_cast %27 : vector<16x8xbf16> to vector<2x8x8xbf16>
    "tpu.trace_start"() <{level = 10 : i32, message = "bqd,bkd->bqk"}> : () -> ()
    %cst_17 = arith.constant dense<0.000000e+00> : vector<2x8x8xf32>
    %29 = tpu.matmul %24, %26, %cst_17 {dimension_numbers = #tpu.dot_dimension_numbers<[2], [2], [1], [1], [0, 0, 0, 1, 1, 1], [0], [0]>} : vector<2x8x8xbf16>, vector<2x8x8xbf16>, vector<2x8x8xf32> -> vector<2x8x8xf32>
    "tpu.trace_stop"() : () -> ()
    %cst_18 = arith.constant dense<0xFF800000> : vector<2x8xf32>
    %30 = vector.multi_reduction <maximumf>, %29, %cst_18 [2] : vector<2x8x8xf32> to vector<2x8xf32>
    %31 = vector.shape_cast %30 : vector<2x8xf32> to vector<2x8x1xf32>
    %32 = vector.broadcast %31 : vector<2x8x1xf32> to vector<2x8x8xf32>
    %33 = arith.subf %29, %32 : vector<2x8x8xf32>
    %34 = math.exp %33 : vector<2x8x8xf32>
    %cst_19 = arith.constant dense<0.000000e+00> : vector<2x8xf32>
    %35 = vector.multi_reduction <add>, %34, %cst_19 [2] : vector<2x8x8xf32> to vector<2x8xf32>
    %36 = vector.shape_cast %35 : vector<2x8xf32> to vector<2x8x1xf32>
    %37 = tpu.reciprocal %36 : vector<2x8x1xf32> -> vector<2x8x1xf32>
    %38 = vector.broadcast %37 : vector<2x8x1xf32> to vector<2x8x8xf32>
    %39 = arith.mulf %34, %38 : vector<2x8x8xf32>
    %40 = arith.truncf %39 : vector<2x8x8xf32> to vector<2x8x8xbf16>
    "tpu.trace_start"() <{level = 10 : i32, message = "bqk,bkd->bqd"}> : () -> ()
    %cst_20 = arith.constant dense<0.000000e+00> : vector<2x8x8xf32>
    %41 = tpu.matmul %40, %28, %cst_20 {dimension_numbers = #tpu.dot_dimension_numbers<[2], [1], [1], [2], [0, 0, 0, 1, 1, 2], [0], [0]>} : vector<2x8x8xbf16>, vector<2x8x8xbf16>, vector<2x8x8xf32> -> vector<2x8x8xf32>
    "tpu.trace_stop"() : () -> ()
    %42 = vector.shape_cast %41 : vector<2x8x8xf32> to vector<16x8xf32>
    %43 = vector.extract_strided_slice %18 {offsets = [0, 8], sizes = [16, 8], strides = [1, 1]} : vector<16x32xbf16> to vector<16x8xbf16>
    %44 = vector.shape_cast %43 : vector<16x8xbf16> to vector<2x8x8xbf16>
    %45 = vector.extract_strided_slice %20 {offsets = [0, 8], sizes = [16, 8], strides = [1, 1]} : vector<16x32xbf16> to vector<16x8xbf16>
    %46 = vector.shape_cast %45 : vector<16x8xbf16> to vector<2x8x8xbf16>
    %47 = vector.extract_strided_slice %22 {offsets = [0, 8], sizes = [16, 8], strides = [1, 1]} : vector<16x32xbf16> to vector<16x8xbf16>
    %48 = vector.shape_cast %47 : vector<16x8xbf16> to vector<2x8x8xbf16>
    "tpu.trace_start"() <{level = 10 : i32, message = "bqd,bkd->bqk"}> : () -> ()
    %cst_21 = arith.constant dense<0.000000e+00> : vector<2x8x8xf32>
    %49 = tpu.matmul %44, %46, %cst_21 {dimension_numbers = #tpu.dot_dimension_numbers<[2], [2], [1], [1], [0, 0, 0, 1, 1, 1], [0], [0]>} : vector<2x8x8xbf16>, vector<2x8x8xbf16>, vector<2x8x8xf32> -> vector<2x8x8xf32>
    "tpu.trace_stop"() : () -> ()
    %cst_22 = arith.constant dense<0xFF800000> : vector<2x8xf32>
    %50 = vector.multi_reduction <maximumf>, %49, %cst_22 [2] : vector<2x8x8xf32> to vector<2x8xf32>
    %51 = vector.shape_cast %50 : vector<2x8xf32> to vector<2x8x1xf32>
    %52 = vector.broadcast %51 : vector<2x8x1xf32> to vector<2x8x8xf32>
    %53 = arith.subf %49, %52 : vector<2x8x8xf32>
    %54 = math.exp %53 : vector<2x8x8xf32>
    %cst_23 = arith.constant dense<0.000000e+00> : vector<2x8xf32>
    %55 = vector.multi_reduction <add>, %54, %cst_23 [2] : vector<2x8x8xf32> to vector<2x8xf32>
    %56 = vector.shape_cast %55 : vector<2x8xf32> to vector<2x8x1xf32>
    %57 = tpu.reciprocal %56 : vector<2x8x1xf32> -> vector<2x8x1xf32>
    %58 = vector.broadcast %57 : vector<2x8x1xf32> to vector<2x8x8xf32>
    %59 = arith.mulf %54, %58 : vector<2x8x8xf32>
    %60 = arith.truncf %59 : vector<2x8x8xf32> to vector<2x8x8xbf16>
    "tpu.trace_start"() <{level = 10 : i32, message = "bqk,bkd->bqd"}> : () -> ()
    %cst_24 = arith.constant dense<0.000000e+00> : vector<2x8x8xf32>
    %61 = tpu.matmul %60, %48, %cst_24 {dimension_numbers = #tpu.dot_dimension_numbers<[2], [1], [1], [2], [0, 0, 0, 1, 1, 2], [0], [0]>} : vector<2x8x8xbf16>, vector<2x8x8xbf16>, vector<2x8x8xf32> -> vector<2x8x8xf32>
    "tpu.trace_stop"() : () -> ()
    %62 = vector.shape_cast %61 : vector<2x8x8xf32> to vector<16x8xf32>
    %63 = vector.extract_strided_slice %18 {offsets = [0, 16], sizes = [16, 8], strides = [1, 1]} : vector<16x32xbf16> to vector<16x8xbf16>
    %64 = vector.shape_cast %63 : vector<16x8xbf16> to vector<2x8x8xbf16>
    %65 = vector.extract_strided_slice %20 {offsets = [0, 16], sizes = [16, 8], strides = [1, 1]} : vector<16x32xbf16> to vector<16x8xbf16>
    %66 = vector.shape_cast %65 : vector<16x8xbf16> to vector<2x8x8xbf16>
    %67 = vector.extract_strided_slice %22 {offsets = [0, 16], sizes = [16, 8], strides = [1, 1]} : vector<16x32xbf16> to vector<16x8xbf16>
    %68 = vector.shape_cast %67 : vector<16x8xbf16> to vector<2x8x8xbf16>
    "tpu.trace_start"() <{level = 10 : i32, message = "bqd,bkd->bqk"}> : () -> ()
    %cst_25 = arith.constant dense<0.000000e+00> : vector<2x8x8xf32>
    %69 = tpu.matmul %64, %66, %cst_25 {dimension_numbers = #tpu.dot_dimension_numbers<[2], [2], [1], [1], [0, 0, 0, 1, 1, 1], [0], [0]>} : vector<2x8x8xbf16>, vector<2x8x8xbf16>, vector<2x8x8xf32> -> vector<2x8x8xf32>
    "tpu.trace_stop"() : () -> ()
    %cst_26 = arith.constant dense<0xFF800000> : vector<2x8xf32>
    %70 = vector.multi_reduction <maximumf>, %69, %cst_26 [2] : vector<2x8x8xf32> to vector<2x8xf32>
    %71 = vector.shape_cast %70 : vector<2x8xf32> to vector<2x8x1xf32>
    %72 = vector.broadcast %71 : vector<2x8x1xf32> to vector<2x8x8xf32>
    %73 = arith.subf %69, %72 : vector<2x8x8xf32>
    %74 = math.exp %73 : vector<2x8x8xf32>
    %cst_27 = arith.constant dense<0.000000e+00> : vector<2x8xf32>
    %75 = vector.multi_reduction <add>, %74, %cst_27 [2] : vector<2x8x8xf32> to vector<2x8xf32>
    %76 = vector.shape_cast %75 : vector<2x8xf32> to vector<2x8x1xf32>
    %77 = tpu.reciprocal %76 : vector<2x8x1xf32> -> vector<2x8x1xf32>
    %78 = vector.broadcast %77 : vector<2x8x1xf32> to vector<2x8x8xf32>
    %79 = arith.mulf %74, %78 : vector<2x8x8xf32>
    %80 = arith.truncf %79 : vector<2x8x8xf32> to vector<2x8x8xbf16>
    "tpu.trace_start"() <{level = 10 : i32, message = "bqk,bkd->bqd"}> : () -> ()
    %cst_28 = arith.constant dense<0.000000e+00> : vector<2x8x8xf32>
    %81 = tpu.matmul %80, %68, %cst_28 {dimension_numbers = #tpu.dot_dimension_numbers<[2], [1], [1], [2], [0, 0, 0, 1, 1, 2], [0], [0]>} : vector<2x8x8xbf16>, vector<2x8x8xbf16>, vector<2x8x8xf32> -> vector<2x8x8xf32>
    "tpu.trace_stop"() : () -> ()
    %82 = vector.shape_cast %81 : vector<2x8x8xf32> to vector<16x8xf32>
    %83 = vector.extract_strided_slice %18 {offsets = [0, 24], sizes = [16, 8], strides = [1, 1]} : vector<16x32xbf16> to vector<16x8xbf16>
    %84 = vector.shape_cast %83 : vector<16x8xbf16> to vector<2x8x8xbf16>
    %85 = vector.extract_strided_slice %20 {offsets = [0, 24], sizes = [16, 8], strides = [1, 1]} : vector<16x32xbf16> to vector<16x8xbf16>
    %86 = vector.shape_cast %85 : vector<16x8xbf16> to vector<2x8x8xbf16>
    %87 = vector.extract_strided_slice %22 {offsets = [0, 24], sizes = [16, 8], strides = [1, 1]} : vector<16x32xbf16> to vector<16x8xbf16>
    %88 = vector.shape_cast %87 : vector<16x8xbf16> to vector<2x8x8xbf16>
    "tpu.trace_start"() <{level = 10 : i32, message = "bqd,bkd->bqk"}> : () -> ()
    %cst_29 = arith.constant dense<0.000000e+00> : vector<2x8x8xf32>
    %89 = tpu.matmul %84, %86, %cst_29 {dimension_numbers = #tpu.dot_dimension_numbers<[2], [2], [1], [1], [0, 0, 0, 1, 1, 1], [0], [0]>} : vector<2x8x8xbf16>, vector<2x8x8xbf16>, vector<2x8x8xf32> -> vector<2x8x8xf32>
    "tpu.trace_stop"() : () -> ()
    %cst_30 = arith.constant dense<0xFF800000> : vector<2x8xf32>
    %90 = vector.multi_reduction <maximumf>, %89, %cst_30 [2] : vector<2x8x8xf32> to vector<2x8xf32>
    %91 = vector.shape_cast %90 : vector<2x8xf32> to vector<2x8x1xf32>
    %92 = vector.broadcast %91 : vector<2x8x1xf32> to vector<2x8x8xf32>
    %93 = arith.subf %89, %92 : vector<2x8x8xf32>
    %94 = math.exp %93 : vector<2x8x8xf32>
    %cst_31 = arith.constant dense<0.000000e+00> : vector<2x8xf32>
    %95 = vector.multi_reduction <add>, %94, %cst_31 [2] : vector<2x8x8xf32> to vector<2x8xf32>
    %96 = vector.shape_cast %95 : vector<2x8xf32> to vector<2x8x1xf32>
    %97 = tpu.reciprocal %96 : vector<2x8x1xf32> -> vector<2x8x1xf32>
    %98 = vector.broadcast %97 : vector<2x8x1xf32> to vector<2x8x8xf32>
    %99 = arith.mulf %94, %98 : vector<2x8x8xf32>
    %100 = arith.truncf %99 : vector<2x8x8xf32> to vector<2x8x8xbf16>
    "tpu.trace_start"() <{level = 10 : i32, message = "bqk,bkd->bqd"}> : () -> ()
    %cst_32 = arith.constant dense<0.000000e+00> : vector<2x8x8xf32>
    %101 = tpu.matmul %100, %88, %cst_32 {dimension_numbers = #tpu.dot_dimension_numbers<[2], [1], [1], [2], [0, 0, 0, 1, 1, 2], [0], [0]>} : vector<2x8x8xbf16>, vector<2x8x8xbf16>, vector<2x8x8xf32> -> vector<2x8x8xf32>
    "tpu.trace_stop"() : () -> ()
    %102 = vector.shape_cast %101 : vector<2x8x8xf32> to vector<16x8xf32>
    %103 = tpu.concatenate %42, %62, %82, %102 in 1 : vector<16x8xf32>, vector<16x8xf32>, vector<16x8xf32>, vector<16x8xf32> -> vector<16x32xf32>
    %104 = arith.truncf %103 : vector<16x32xf32> to vector<16x32xbf16>
    %cst_33 = arith.constant dense<0.000000e+00> : vector<16x32xf32>
    %105 = tpu.matmul %104, %6, %cst_33 {dimension_numbers = #tpu.dot_dimension_numbers<[1], [0], [0], [1], [0, 0, 1, 1], [], []>} : vector<16x32xbf16>, vector<32x32xbf16>, vector<16x32xf32> -> vector<16x32xf32>
    %c0_34 = arith.constant 0 : index
    %c0_35 = arith.constant 0 : index
    %c0_36 = arith.constant 0 : index
    %106 = vector.load %arg5[%c0_34, %c0_35, %c0_36] : memref<2x1x32xf32, #tpu.memory_space<vmem>>, vector<1x1x32xf32>
    %107 = vector.shape_cast %106 : vector<1x1x32xf32> to vector<1x32xf32>
    %108 = vector.broadcast %107 : vector<1x32xf32> to vector<16x32xf32>
    %109 = arith.addf %105, %108 : vector<16x32xf32>
    %110 = arith.addf %2, %109 : vector<16x32xf32>
    %cst_37 = arith.constant dense<0.000000e+00> : vector<16xf32>
    %111 = vector.multi_reduction <add>, %110, %cst_37 [1] : vector<16x32xf32> to vector<16xf32>
    %112 = vector.shape_cast %111 : vector<16xf32> to vector<16x1xf32>
    %cst_38 = arith.constant 3.200000e+01 : f32
    %113 = vector.broadcast %cst_38 : f32 to vector<16x1xf32>
    %114 = arith.divf %112, %113 : vector<16x1xf32>
    %115 = vector.broadcast %114 : vector<16x1xf32> to vector<16x32xf32>
    %116 = arith.subf %110, %115 : vector<16x32xf32>
    %117 = arith.mulf %116, %116 : vector<16x32xf32>
    %cst_39 = arith.constant dense<0.000000e+00> : vector<16xf32>
    %118 = vector.multi_reduction <add>, %117, %cst_39 [1] : vector<16x32xf32> to vector<16xf32>
    %119 = vector.shape_cast %118 : vector<16xf32> to vector<16x1xf32>
    %cst_40 = arith.constant 3.200000e+01 : f32
    %120 = vector.broadcast %cst_40 : f32 to vector<16x1xf32>
    %121 = arith.divf %119, %120 : vector<16x1xf32>
    %122 = vector.broadcast %114 : vector<16x1xf32> to vector<16x32xf32>
    %123 = arith.subf %110, %122 : vector<16x32xf32>
    %cst_41 = arith.constant 9.99999974E-6 : f32
    %124 = vector.broadcast %cst_41 : f32 to vector<16x1xf32>
    %125 = arith.addf %121, %124 : vector<16x1xf32>
    %126 = math.rsqrt %125 : vector<16x1xf32>
    %127 = vector.broadcast %126 : vector<16x1xf32> to vector<16x32xf32>
    %128 = arith.mulf %123, %127 : vector<16x32xf32>
    %c0_42 = arith.constant 0 : index
    %c0_43 = arith.constant 0 : index
    %c0_44 = arith.constant 0 : index
    %129 = vector.load %arg6[%c0_42, %c0_43, %c0_44] : memref<2x1x32xf32, #tpu.memory_space<vmem>>, vector<1x1x32xf32>
    %130 = vector.shape_cast %129 : vector<1x1x32xf32> to vector<1x32xf32>
    %131 = vector.broadcast %130 : vector<1x32xf32> to vector<16x32xf32>
    %132 = arith.mulf %128, %131 : vector<16x32xf32>
    %c0_45 = arith.constant 0 : index
    %c0_46 = arith.constant 0 : index
    %c0_47 = arith.constant 0 : index
    %133 = vector.load %arg7[%c0_45, %c0_46, %c0_47] : memref<2x1x32xf32, #tpu.memory_space<vmem>>, vector<1x1x32xf32>
    %134 = vector.shape_cast %133 : vector<1x1x32xf32> to vector<1x32xf32>
    %135 = vector.broadcast %134 : vector<1x32xf32> to vector<16x32xf32>
    %136 = arith.addf %132, %135 : vector<16x32xf32>
    %137 = arith.truncf %136 : vector<16x32xf32> to vector<16x32xbf16>
    %cst_48 = arith.constant dense<0.000000e+00> : vector<16x64xf32>
    %138 = tpu.matmul %137, %8, %cst_48 {dimension_numbers = #tpu.dot_dimension_numbers<[1], [0], [0], [1], [0, 0, 1, 1], [], []>} : vector<16x32xbf16>, vector<32x64xbf16>, vector<16x64xf32> -> vector<16x64xf32>
    %c0_49 = arith.constant 0 : index
    %c0_50 = arith.constant 0 : index
    %c0_51 = arith.constant 0 : index
    %139 = vector.load %arg9[%c0_49, %c0_50, %c0_51] : memref<2x1x64xf32, #tpu.memory_space<vmem>>, vector<1x1x64xf32>
    %140 = vector.shape_cast %139 : vector<1x1x64xf32> to vector<1x64xf32>
    %141 = vector.broadcast %140 : vector<1x64xf32> to vector<16x64xf32>
    %142 = arith.addf %138, %141 : vector<16x64xf32>
    %cst_52 = arith.constant 0.000000e+00 : f32
    %143 = vector.broadcast %cst_52 : f32 to vector<16x64xf32>
    %144 = arith.maximumf %142, %143 : vector<16x64xf32>
    %145 = arith.truncf %144 : vector<16x64xf32> to vector<16x64xbf16>
    %cst_53 = arith.constant dense<0.000000e+00> : vector<16x32xf32>
    %146 = tpu.matmul %145, %10, %cst_53 {dimension_numbers = #tpu.dot_dimension_numbers<[1], [0], [0], [1], [0, 0, 1, 1], [], []>} : vector<16x64xbf16>, vector<64x32xbf16>, vector<16x32xf32> -> vector<16x32xf32>
    %c0_54 = arith.constant 0 : index
    %c0_55 = arith.constant 0 : index
    %c0_56 = arith.constant 0 : index
    %147 = vector.load %arg11[%c0_54, %c0_55, %c0_56] : memref<2x1x32xf32, #tpu.memory_space<vmem>>, vector<1x1x32xf32>
    %148 = vector.shape_cast %147 : vector<1x1x32xf32> to vector<1x32xf32>
    %149 = vector.broadcast %148 : vector<1x32xf32> to vector<16x32xf32>
    %150 = arith.addf %146, %149 : vector<16x32xf32>
    %151 = arith.addf %136, %150 : vector<16x32xf32>
    %cst_57 = arith.constant dense<0.000000e+00> : vector<16xf32>
    %152 = vector.multi_reduction <add>, %151, %cst_57 [1] : vector<16x32xf32> to vector<16xf32>
    %153 = vector.shape_cast %152 : vector<16xf32> to vector<16x1xf32>
    %cst_58 = arith.constant 3.200000e+01 : f32
    %154 = vector.broadcast %cst_58 : f32 to vector<16x1xf32>
    %155 = arith.divf %153, %154 : vector<16x1xf32>
    %156 = vector.broadcast %155 : vector<16x1xf32> to vector<16x32xf32>
    %157 = arith.subf %151, %156 : vector<16x32xf32>
    %158 = arith.mulf %157, %157 : vector<16x32xf32>
    %cst_59 = arith.constant dense<0.000000e+00> : vector<16xf32>
    %159 = vector.multi_reduction <add>, %158, %cst_59 [1] : vector<16x32xf32> to vector<16xf32>
    %160 = vector.shape_cast %159 : vector<16xf32> to vector<16x1xf32>
    %cst_60 = arith.constant 3.200000e+01 : f32
    %161 = vector.broadcast %cst_60 : f32 to vector<16x1xf32>
    %162 = arith.divf %160, %161 : vector<16x1xf32>
    %163 = vector.broadcast %155 : vector<16x1xf32> to vector<16x32xf32>
    %164 = arith.subf %151, %163 : vector<16x32xf32>
    %cst_61 = arith.constant 9.99999974E-6 : f32
    %165 = vector.broadcast %cst_61 : f32 to vector<16x1xf32>
    %166 = arith.addf %162, %165 : vector<16x1xf32>
    %167 = math.rsqrt %166 : vector<16x1xf32>
    %168 = vector.broadcast %167 : vector<16x1xf32> to vector<16x32xf32>
    %169 = arith.mulf %164, %168 : vector<16x32xf32>
    %c0_62 = arith.constant 0 : index
    %c0_63 = arith.constant 0 : index
    %c0_64 = arith.constant 0 : index
    %170 = vector.load %arg12[%c0_62, %c0_63, %c0_64] : memref<2x1x32xf32, #tpu.memory_space<vmem>>, vector<1x1x32xf32>
    %171 = vector.shape_cast %170 : vector<1x1x32xf32> to vector<1x32xf32>
    %172 = vector.broadcast %171 : vector<1x32xf32> to vector<16x32xf32>
    %173 = arith.mulf %169, %172 : vector<16x32xf32>
    %c0_65 = arith.constant 0 : index
    %c0_66 = arith.constant 0 : index
    %c0_67 = arith.constant 0 : index
    %174 = vector.load %arg13[%c0_65, %c0_66, %c0_67] : memref<2x1x32xf32, #tpu.memory_space<vmem>>, vector<1x1x32xf32>
    %175 = vector.shape_cast %174 : vector<1x1x32xf32> to vector<1x32xf32>
    %176 = vector.broadcast %175 : vector<1x32xf32> to vector<16x32xf32>
    %177 = arith.addf %173, %176 : vector<16x32xf32>
    %c1 = arith.constant 1 : index
    %c0_68 = arith.constant 0 : index
    %c0_69 = arith.constant 0 : index
    %178 = vector.load %arg2[%c1, %c0_68, %c0_69] : memref<2x32x96xbf16, #tpu.memory_space<vmem>>, vector<1x32x96xbf16>
    %179 = vector.shape_cast %178 : vector<1x32x96xbf16> to vector<32x96xbf16>
    %c1_70 = arith.constant 1 : index
    %c0_71 = arith.constant 0 : index
    %c0_72 = arith.constant 0 : index
    %180 = vector.load %arg4[%c1_70, %c0_71, %c0_72] : memref<2x32x32xbf16, #tpu.memory_space<vmem>>, vector<1x32x32xbf16>
    %181 = vector.shape_cast %180 : vector<1x32x32xbf16> to vector<32x32xbf16>
    %c1_73 = arith.constant 1 : index
    %c0_74 = arith.constant 0 : index
    %c0_75 = arith.constant 0 : index
    %182 = vector.load %arg8[%c1_73, %c0_74, %c0_75] : memref<2x32x64xbf16, #tpu.memory_space<vmem>>, vector<1x32x64xbf16>
    %183 = vector.shape_cast %182 : vector<1x32x64xbf16> to vector<32x64xbf16>
    %c1_76 = arith.constant 1 : index
    %c0_77 = arith.constant 0 : index
    %c0_78 = arith.constant 0 : index
    %184 = vector.load %arg10[%c1_76, %c0_77, %c0_78] : memref<2x64x32xbf16, #tpu.memory_space<vmem>>, vector<1x64x32xbf16>
    %185 = vector.shape_cast %184 : vector<1x64x32xbf16> to vector<64x32xbf16>
    %186 = arith.truncf %177 : vector<16x32xf32> to vector<16x32xbf16>
    %cst_79 = arith.constant dense<0.000000e+00> : vector<16x96xf32>
    %187 = tpu.matmul %186, %179, %cst_79 {dimension_numbers = #tpu.dot_dimension_numbers<[1], [0], [0], [1], [0, 0, 1, 1], [], []>} : vector<16x32xbf16>, vector<32x96xbf16>, vector<16x96xf32> -> vector<16x96xf32>
    %c1_80 = arith.constant 1 : index
    %c0_81 = arith.constant 0 : index
    %c0_82 = arith.constant 0 : index
    %188 = vector.load %arg3[%c1_80, %c0_81, %c0_82] : memref<2x1x96xf32, #tpu.memory_space<vmem>>, vector<1x1x96xf32>
    %189 = vector.shape_cast %188 : vector<1x1x96xf32> to vector<1x96xf32>
    %190 = vector.broadcast %189 : vector<1x96xf32> to vector<16x96xf32>
    %191 = arith.addf %187, %190 : vector<16x96xf32>
    %192 = vector.extract_strided_slice %191 {offsets = [0, 0], sizes = [16, 32], strides = [1, 1]} : vector<16x96xf32> to vector<16x32xf32>
    %193 = arith.truncf %192 : vector<16x32xf32> to vector<16x32xbf16>
    %194 = vector.extract_strided_slice %191 {offsets = [0, 32], sizes = [16, 32], strides = [1, 1]} : vector<16x96xf32> to vector<16x32xf32>
    %195 = arith.truncf %194 : vector<16x32xf32> to vector<16x32xbf16>
    %196 = vector.extract_strided_slice %191 {offsets = [0, 64], sizes = [16, 32], strides = [1, 1]} : vector<16x96xf32> to vector<16x32xf32>
    %197 = arith.truncf %196 : vector<16x32xf32> to vector<16x32xbf16>
    %198 = vector.extract_strided_slice %193 {offsets = [0, 0], sizes = [16, 8], strides = [1, 1]} : vector<16x32xbf16> to vector<16x8xbf16>
    %199 = vector.shape_cast %198 : vector<16x8xbf16> to vector<2x8x8xbf16>
    %200 = vector.extract_strided_slice %195 {offsets = [0, 0], sizes = [16, 8], strides = [1, 1]} : vector<16x32xbf16> to vector<16x8xbf16>
    %201 = vector.shape_cast %200 : vector<16x8xbf16> to vector<2x8x8xbf16>
    %202 = vector.extract_strided_slice %197 {offsets = [0, 0], sizes = [16, 8], strides = [1, 1]} : vector<16x32xbf16> to vector<16x8xbf16>
    %203 = vector.shape_cast %202 : vector<16x8xbf16> to vector<2x8x8xbf16>
    "tpu.trace_start"() <{level = 10 : i32, message = "bqd,bkd->bqk"}> : () -> ()
    %cst_83 = arith.constant dense<0.000000e+00> : vector<2x8x8xf32>
    %204 = tpu.matmul %199, %201, %cst_83 {dimension_numbers = #tpu.dot_dimension_numbers<[2], [2], [1], [1], [0, 0, 0, 1, 1, 1], [0], [0]>} : vector<2x8x8xbf16>, vector<2x8x8xbf16>, vector<2x8x8xf32> -> vector<2x8x8xf32>
    "tpu.trace_stop"() : () -> ()
    %cst_84 = arith.constant dense<0xFF800000> : vector<2x8xf32>
    %205 = vector.multi_reduction <maximumf>, %204, %cst_84 [2] : vector<2x8x8xf32> to vector<2x8xf32>
    %206 = vector.shape_cast %205 : vector<2x8xf32> to vector<2x8x1xf32>
    %207 = vector.broadcast %206 : vector<2x8x1xf32> to vector<2x8x8xf32>
    %208 = arith.subf %204, %207 : vector<2x8x8xf32>
    %209 = math.exp %208 : vector<2x8x8xf32>
    %cst_85 = arith.constant dense<0.000000e+00> : vector<2x8xf32>
    %210 = vector.multi_reduction <add>, %209, %cst_85 [2] : vector<2x8x8xf32> to vector<2x8xf32>
    %211 = vector.shape_cast %210 : vector<2x8xf32> to vector<2x8x1xf32>
    %212 = tpu.reciprocal %211 : vector<2x8x1xf32> -> vector<2x8x1xf32>
    %213 = vector.broadcast %212 : vector<2x8x1xf32> to vector<2x8x8xf32>
    %214 = arith.mulf %209, %213 : vector<2x8x8xf32>
    %215 = arith.truncf %214 : vector<2x8x8xf32> to vector<2x8x8xbf16>
    "tpu.trace_start"() <{level = 10 : i32, message = "bqk,bkd->bqd"}> : () -> ()
    %cst_86 = arith.constant dense<0.000000e+00> : vector<2x8x8xf32>
    %216 = tpu.matmul %215, %203, %cst_86 {dimension_numbers = #tpu.dot_dimension_numbers<[2], [1], [1], [2], [0, 0, 0, 1, 1, 2], [0], [0]>} : vector<2x8x8xbf16>, vector<2x8x8xbf16>, vector<2x8x8xf32> -> vector<2x8x8xf32>
    "tpu.trace_stop"() : () -> ()
    %217 = vector.shape_cast %216 : vector<2x8x8xf32> to vector<16x8xf32>
    %218 = vector.extract_strided_slice %193 {offsets = [0, 8], sizes = [16, 8], strides = [1, 1]} : vector<16x32xbf16> to vector<16x8xbf16>
    %219 = vector.shape_cast %218 : vector<16x8xbf16> to vector<2x8x8xbf16>
    %220 = vector.extract_strided_slice %195 {offsets = [0, 8], sizes = [16, 8], strides = [1, 1]} : vector<16x32xbf16> to vector<16x8xbf16>
    %221 = vector.shape_cast %220 : vector<16x8xbf16> to vector<2x8x8xbf16>
    %222 = vector.extract_strided_slice %197 {offsets = [0, 8], sizes = [16, 8], strides = [1, 1]} : vector<16x32xbf16> to vector<16x8xbf16>
    %223 = vector.shape_cast %222 : vector<16x8xbf16> to vector<2x8x8xbf16>
    "tpu.trace_start"() <{level = 10 : i32, message = "bqd,bkd->bqk"}> : () -> ()
    %cst_87 = arith.constant dense<0.000000e+00> : vector<2x8x8xf32>
    %224 = tpu.matmul %219, %221, %cst_87 {dimension_numbers = #tpu.dot_dimension_numbers<[2], [2], [1], [1], [0, 0, 0, 1, 1, 1], [0], [0]>} : vector<2x8x8xbf16>, vector<2x8x8xbf16>, vector<2x8x8xf32> -> vector<2x8x8xf32>
    "tpu.trace_stop"() : () -> ()
    %cst_88 = arith.constant dense<0xFF800000> : vector<2x8xf32>
    %225 = vector.multi_reduction <maximumf>, %224, %cst_88 [2] : vector<2x8x8xf32> to vector<2x8xf32>
    %226 = vector.shape_cast %225 : vector<2x8xf32> to vector<2x8x1xf32>
    %227 = vector.broadcast %226 : vector<2x8x1xf32> to vector<2x8x8xf32>
    %228 = arith.subf %224, %227 : vector<2x8x8xf32>
    %229 = math.exp %228 : vector<2x8x8xf32>
    %cst_89 = arith.constant dense<0.000000e+00> : vector<2x8xf32>
    %230 = vector.multi_reduction <add>, %229, %cst_89 [2] : vector<2x8x8xf32> to vector<2x8xf32>
    %231 = vector.shape_cast %230 : vector<2x8xf32> to vector<2x8x1xf32>
    %232 = tpu.reciprocal %231 : vector<2x8x1xf32> -> vector<2x8x1xf32>
    %233 = vector.broadcast %232 : vector<2x8x1xf32> to vector<2x8x8xf32>
    %234 = arith.mulf %229, %233 : vector<2x8x8xf32>
    %235 = arith.truncf %234 : vector<2x8x8xf32> to vector<2x8x8xbf16>
    "tpu.trace_start"() <{level = 10 : i32, message = "bqk,bkd->bqd"}> : () -> ()
    %cst_90 = arith.constant dense<0.000000e+00> : vector<2x8x8xf32>
    %236 = tpu.matmul %235, %223, %cst_90 {dimension_numbers = #tpu.dot_dimension_numbers<[2], [1], [1], [2], [0, 0, 0, 1, 1, 2], [0], [0]>} : vector<2x8x8xbf16>, vector<2x8x8xbf16>, vector<2x8x8xf32> -> vector<2x8x8xf32>
    "tpu.trace_stop"() : () -> ()
    %237 = vector.shape_cast %236 : vector<2x8x8xf32> to vector<16x8xf32>
    %238 = vector.extract_strided_slice %193 {offsets = [0, 16], sizes = [16, 8], strides = [1, 1]} : vector<16x32xbf16> to vector<16x8xbf16>
    %239 = vector.shape_cast %238 : vector<16x8xbf16> to vector<2x8x8xbf16>
    %240 = vector.extract_strided_slice %195 {offsets = [0, 16], sizes = [16, 8], strides = [1, 1]} : vector<16x32xbf16> to vector<16x8xbf16>
    %241 = vector.shape_cast %240 : vector<16x8xbf16> to vector<2x8x8xbf16>
    %242 = vector.extract_strided_slice %197 {offsets = [0, 16], sizes = [16, 8], strides = [1, 1]} : vector<16x32xbf16> to vector<16x8xbf16>
    %243 = vector.shape_cast %242 : vector<16x8xbf16> to vector<2x8x8xbf16>
    "tpu.trace_start"() <{level = 10 : i32, message = "bqd,bkd->bqk"}> : () -> ()
    %cst_91 = arith.constant dense<0.000000e+00> : vector<2x8x8xf32>
    %244 = tpu.matmul %239, %241, %cst_91 {dimension_numbers = #tpu.dot_dimension_numbers<[2], [2], [1], [1], [0, 0, 0, 1, 1, 1], [0], [0]>} : vector<2x8x8xbf16>, vector<2x8x8xbf16>, vector<2x8x8xf32> -> vector<2x8x8xf32>
    "tpu.trace_stop"() : () -> ()
    %cst_92 = arith.constant dense<0xFF800000> : vector<2x8xf32>
    %245 = vector.multi_reduction <maximumf>, %244, %cst_92 [2] : vector<2x8x8xf32> to vector<2x8xf32>
    %246 = vector.shape_cast %245 : vector<2x8xf32> to vector<2x8x1xf32>
    %247 = vector.broadcast %246 : vector<2x8x1xf32> to vector<2x8x8xf32>
    %248 = arith.subf %244, %247 : vector<2x8x8xf32>
    %249 = math.exp %248 : vector<2x8x8xf32>
    %cst_93 = arith.constant dense<0.000000e+00> : vector<2x8xf32>
    %250 = vector.multi_reduction <add>, %249, %cst_93 [2] : vector<2x8x8xf32> to vector<2x8xf32>
    %251 = vector.shape_cast %250 : vector<2x8xf32> to vector<2x8x1xf32>
    %252 = tpu.reciprocal %251 : vector<2x8x1xf32> -> vector<2x8x1xf32>
    %253 = vector.broadcast %252 : vector<2x8x1xf32> to vector<2x8x8xf32>
    %254 = arith.mulf %249, %253 : vector<2x8x8xf32>
    %255 = arith.truncf %254 : vector<2x8x8xf32> to vector<2x8x8xbf16>
    "tpu.trace_start"() <{level = 10 : i32, message = "bqk,bkd->bqd"}> : () -> ()
    %cst_94 = arith.constant dense<0.000000e+00> : vector<2x8x8xf32>
    %256 = tpu.matmul %255, %243, %cst_94 {dimension_numbers = #tpu.dot_dimension_numbers<[2], [1], [1], [2], [0, 0, 0, 1, 1, 2], [0], [0]>} : vector<2x8x8xbf16>, vector<2x8x8xbf16>, vector<2x8x8xf32> -> vector<2x8x8xf32>
    "tpu.trace_stop"() : () -> ()
    %257 = vector.shape_cast %256 : vector<2x8x8xf32> to vector<16x8xf32>
    %258 = vector.extract_strided_slice %193 {offsets = [0, 24], sizes = [16, 8], strides = [1, 1]} : vector<16x32xbf16> to vector<16x8xbf16>
    %259 = vector.shape_cast %258 : vector<16x8xbf16> to vector<2x8x8xbf16>
    %260 = vector.extract_strided_slice %195 {offsets = [0, 24], sizes = [16, 8], strides = [1, 1]} : vector<16x32xbf16> to vector<16x8xbf16>
    %261 = vector.shape_cast %260 : vector<16x8xbf16> to vector<2x8x8xbf16>
    %262 = vector.extract_strided_slice %197 {offsets = [0, 24], sizes = [16, 8], strides = [1, 1]} : vector<16x32xbf16> to vector<16x8xbf16>
    %263 = vector.shape_cast %262 : vector<16x8xbf16> to vector<2x8x8xbf16>
    "tpu.trace_start"() <{level = 10 : i32, message = "bqd,bkd->bqk"}> : () -> ()
    %cst_95 = arith.constant dense<0.000000e+00> : vector<2x8x8xf32>
    %264 = tpu.matmul %259, %261, %cst_95 {dimension_numbers = #tpu.dot_dimension_numbers<[2], [2], [1], [1], [0, 0, 0, 1, 1, 1], [0], [0]>} : vector<2x8x8xbf16>, vector<2x8x8xbf16>, vector<2x8x8xf32> -> vector<2x8x8xf32>
    "tpu.trace_stop"() : () -> ()
    %cst_96 = arith.constant dense<0xFF800000> : vector<2x8xf32>
    %265 = vector.multi_reduction <maximumf>, %264, %cst_96 [2] : vector<2x8x8xf32> to vector<2x8xf32>
    %266 = vector.shape_cast %265 : vector<2x8xf32> to vector<2x8x1xf32>
    %267 = vector.broadcast %266 : vector<2x8x1xf32> to vector<2x8x8xf32>
    %268 = arith.subf %264, %267 : vector<2x8x8xf32>
    %269 = math.exp %268 : vector<2x8x8xf32>
    %cst_97 = arith.constant dense<0.000000e+00> : vector<2x8xf32>
    %270 = vector.multi_reduction <add>, %269, %cst_97 [2] : vector<2x8x8xf32> to vector<2x8xf32>
    %271 = vector.shape_cast %270 : vector<2x8xf32> to vector<2x8x1xf32>
    %272 = tpu.reciprocal %271 : vector<2x8x1xf32> -> vector<2x8x1xf32>
    %273 = vector.broadcast %272 : vector<2x8x1xf32> to vector<2x8x8xf32>
    %274 = arith.mulf %269, %273 : vector<2x8x8xf32>
    %275 = arith.truncf %274 : vector<2x8x8xf32> to vector<2x8x8xbf16>
    "tpu.trace_start"() <{level = 10 : i32, message = "bqk,bkd->bqd"}> : () -> ()
    %cst_98 = arith.constant dense<0.000000e+00> : vector<2x8x8xf32>
    %276 = tpu.matmul %275, %263, %cst_98 {dimension_numbers = #tpu.dot_dimension_numbers<[2], [1], [1], [2], [0, 0, 0, 1, 1, 2], [0], [0]>} : vector<2x8x8xbf16>, vector<2x8x8xbf16>, vector<2x8x8xf32> -> vector<2x8x8xf32>
    "tpu.trace_stop"() : () -> ()
    %277 = vector.shape_cast %276 : vector<2x8x8xf32> to vector<16x8xf32>
    %278 = tpu.concatenate %217, %237, %257, %277 in 1 : vector<16x8xf32>, vector<16x8xf32>, vector<16x8xf32>, vector<16x8xf32> -> vector<16x32xf32>
    %279 = arith.truncf %278 : vector<16x32xf32> to vector<16x32xbf16>
    %cst_99 = arith.constant dense<0.000000e+00> : vector<16x32xf32>
    %280 = tpu.matmul %279, %181, %cst_99 {dimension_numbers = #tpu.dot_dimension_numbers<[1], [0], [0], [1], [0, 0, 1, 1], [], []>} : vector<16x32xbf16>, vector<32x32xbf16>, vector<16x32xf32> -> vector<16x32xf32>
    %c1_100 = arith.constant 1 : index
    %c0_101 = arith.constant 0 : index
    %c0_102 = arith.constant 0 : index
    %281 = vector.load %arg5[%c1_100, %c0_101, %c0_102] : memref<2x1x32xf32, #tpu.memory_space<vmem>>, vector<1x1x32xf32>
    %282 = vector.shape_cast %281 : vector<1x1x32xf32> to vector<1x32xf32>
    %283 = vector.broadcast %282 : vector<1x32xf32> to vector<16x32xf32>
    %284 = arith.addf %280, %283 : vector<16x32xf32>
    %285 = arith.addf %177, %284 : vector<16x32xf32>
    %cst_103 = arith.constant dense<0.000000e+00> : vector<16xf32>
    %286 = vector.multi_reduction <add>, %285, %cst_103 [1] : vector<16x32xf32> to vector<16xf32>
    %287 = vector.shape_cast %286 : vector<16xf32> to vector<16x1xf32>
    %cst_104 = arith.constant 3.200000e+01 : f32
    %288 = vector.broadcast %cst_104 : f32 to vector<16x1xf32>
    %289 = arith.divf %287, %288 : vector<16x1xf32>
    %290 = vector.broadcast %289 : vector<16x1xf32> to vector<16x32xf32>
    %291 = arith.subf %285, %290 : vector<16x32xf32>
    %292 = arith.mulf %291, %291 : vector<16x32xf32>
    %cst_105 = arith.constant dense<0.000000e+00> : vector<16xf32>
    %293 = vector.multi_reduction <add>, %292, %cst_105 [1] : vector<16x32xf32> to vector<16xf32>
    %294 = vector.shape_cast %293 : vector<16xf32> to vector<16x1xf32>
    %cst_106 = arith.constant 3.200000e+01 : f32
    %295 = vector.broadcast %cst_106 : f32 to vector<16x1xf32>
    %296 = arith.divf %294, %295 : vector<16x1xf32>
    %297 = vector.broadcast %289 : vector<16x1xf32> to vector<16x32xf32>
    %298 = arith.subf %285, %297 : vector<16x32xf32>
    %cst_107 = arith.constant 9.99999974E-6 : f32
    %299 = vector.broadcast %cst_107 : f32 to vector<16x1xf32>
    %300 = arith.addf %296, %299 : vector<16x1xf32>
    %301 = math.rsqrt %300 : vector<16x1xf32>
    %302 = vector.broadcast %301 : vector<16x1xf32> to vector<16x32xf32>
    %303 = arith.mulf %298, %302 : vector<16x32xf32>
    %c1_108 = arith.constant 1 : index
    %c0_109 = arith.constant 0 : index
    %c0_110 = arith.constant 0 : index
    %304 = vector.load %arg6[%c1_108, %c0_109, %c0_110] : memref<2x1x32xf32, #tpu.memory_space<vmem>>, vector<1x1x32xf32>
    %305 = vector.shape_cast %304 : vector<1x1x32xf32> to vector<1x32xf32>
    %306 = vector.broadcast %305 : vector<1x32xf32> to vector<16x32xf32>
    %307 = arith.mulf %303, %306 : vector<16x32xf32>
    %c1_111 = arith.constant 1 : index
    %c0_112 = arith.constant 0 : index
    %c0_113 = arith.constant 0 : index
    %308 = vector.load %arg7[%c1_111, %c0_112, %c0_113] : memref<2x1x32xf32, #tpu.memory_space<vmem>>, vector<1x1x32xf32>
    %309 = vector.shape_cast %308 : vector<1x1x32xf32> to vector<1x32xf32>
    %310 = vector.broadcast %309 : vector<1x32xf32> to vector<16x32xf32>
    %311 = arith.addf %307, %310 : vector<16x32xf32>
    %312 = arith.truncf %311 : vector<16x32xf32> to vector<16x32xbf16>
    %cst_114 = arith.constant dense<0.000000e+00> : vector<16x64xf32>
    %313 = tpu.matmul %312, %183, %cst_114 {dimension_numbers = #tpu.dot_dimension_numbers<[1], [0], [0], [1], [0, 0, 1, 1], [], []>} : vector<16x32xbf16>, vector<32x64xbf16>, vector<16x64xf32> -> vector<16x64xf32>
    %c1_115 = arith.constant 1 : index
    %c0_116 = arith.constant 0 : index
    %c0_117 = arith.constant 0 : index
    %314 = vector.load %arg9[%c1_115, %c0_116, %c0_117] : memref<2x1x64xf32, #tpu.memory_space<vmem>>, vector<1x1x64xf32>
    %315 = vector.shape_cast %314 : vector<1x1x64xf32> to vector<1x64xf32>
    %316 = vector.broadcast %315 : vector<1x64xf32> to vector<16x64xf32>
    %317 = arith.addf %313, %316 : vector<16x64xf32>
    %cst_118 = arith.constant 0.000000e+00 : f32
    %318 = vector.broadcast %cst_118 : f32 to vector<16x64xf32>
    %319 = arith.maximumf %317, %318 : vector<16x64xf32>
    %320 = arith.truncf %319 : vector<16x64xf32> to vector<16x64xbf16>
    %cst_119 = arith.constant dense<0.000000e+00> : vector<16x32xf32>
    %321 = tpu.matmul %320, %185, %cst_119 {dimension_numbers = #tpu.dot_dimension_numbers<[1], [0], [0], [1], [0, 0, 1, 1], [], []>} : vector<16x64xbf16>, vector<64x32xbf16>, vector<16x32xf32> -> vector<16x32xf32>
    %c1_120 = arith.constant 1 : index
    %c0_121 = arith.constant 0 : index
    %c0_122 = arith.constant 0 : index
    %322 = vector.load %arg11[%c1_120, %c0_121, %c0_122] : memref<2x1x32xf32, #tpu.memory_space<vmem>>, vector<1x1x32xf32>
    %323 = vector.shape_cast %322 : vector<1x1x32xf32> to vector<1x32xf32>
    %324 = vector.broadcast %323 : vector<1x32xf32> to vector<16x32xf32>
    %325 = arith.addf %321, %324 : vector<16x32xf32>
    %326 = arith.addf %311, %325 : vector<16x32xf32>
    %cst_123 = arith.constant dense<0.000000e+00> : vector<16xf32>
    %327 = vector.multi_reduction <add>, %326, %cst_123 [1] : vector<16x32xf32> to vector<16xf32>
    %328 = vector.shape_cast %327 : vector<16xf32> to vector<16x1xf32>
    %cst_124 = arith.constant 3.200000e+01 : f32
    %329 = vector.broadcast %cst_124 : f32 to vector<16x1xf32>
    %330 = arith.divf %328, %329 : vector<16x1xf32>
    %331 = vector.broadcast %330 : vector<16x1xf32> to vector<16x32xf32>
    %332 = arith.subf %326, %331 : vector<16x32xf32>
    %333 = arith.mulf %332, %332 : vector<16x32xf32>
    %cst_125 = arith.constant dense<0.000000e+00> : vector<16xf32>
    %334 = vector.multi_reduction <add>, %333, %cst_125 [1] : vector<16x32xf32> to vector<16xf32>
    %335 = vector.shape_cast %334 : vector<16xf32> to vector<16x1xf32>
    %cst_126 = arith.constant 3.200000e+01 : f32
    %336 = vector.broadcast %cst_126 : f32 to vector<16x1xf32>
    %337 = arith.divf %335, %336 : vector<16x1xf32>
    %338 = vector.broadcast %330 : vector<16x1xf32> to vector<16x32xf32>
    %339 = arith.subf %326, %338 : vector<16x32xf32>
    %cst_127 = arith.constant 9.99999974E-6 : f32
    %340 = vector.broadcast %cst_127 : f32 to vector<16x1xf32>
    %341 = arith.addf %337, %340 : vector<16x1xf32>
    %342 = math.rsqrt %341 : vector<16x1xf32>
    %343 = vector.broadcast %342 : vector<16x1xf32> to vector<16x32xf32>
    %344 = arith.mulf %339, %343 : vector<16x32xf32>
    %c1_128 = arith.constant 1 : index
    %c0_129 = arith.constant 0 : index
    %c0_130 = arith.constant 0 : index
    %345 = vector.load %arg12[%c1_128, %c0_129, %c0_130] : memref<2x1x32xf32, #tpu.memory_space<vmem>>, vector<1x1x32xf32>
    %346 = vector.shape_cast %345 : vector<1x1x32xf32> to vector<1x32xf32>
    %347 = vector.broadcast %346 : vector<1x32xf32> to vector<16x32xf32>
    %348 = arith.mulf %344, %347 : vector<16x32xf32>
    %c1_131 = arith.constant 1 : index
    %c0_132 = arith.constant 0 : index
    %c0_133 = arith.constant 0 : index
    %349 = vector.load %arg13[%c1_131, %c0_132, %c0_133] : memref<2x1x32xf32, #tpu.memory_space<vmem>>, vector<1x1x32xf32>
    %350 = vector.shape_cast %349 : vector<1x1x32xf32> to vector<1x32xf32>
    %351 = vector.broadcast %350 : vector<1x32xf32> to vector<16x32xf32>
    %352 = arith.addf %348, %351 : vector<16x32xf32>
    %353 = vector.shape_cast %352 : vector<16x32xf32> to vector<2x8x32xf32>
    %cst_134 = arith.constant dense<0.000000e+00> : vector<2x32xf32>
    %354 = vector.multi_reduction <add>, %353, %cst_134 [1] : vector<2x8x32xf32> to vector<2x32xf32>
    %355 = vector.shape_cast %354 : vector<2x32xf32> to vector<2x1x32xf32>
    %cst_135 = arith.constant 8.000000e+00 : f32
    %356 = vector.broadcast %cst_135 : f32 to vector<2x1x32xf32>
    %357 = arith.divf %355, %356 : vector<2x1x32xf32>
    %c0_136 = arith.constant 0 : index
    %c0_137 = arith.constant 0 : index
    %c0_138 = arith.constant 0 : index
    %358 = vector.load %arg14[%c0_136, %c0_137, %c0_138] : memref<2x1x32xf32, #tpu.memory_space<vmem>>, vector<2x1x32xf32>
    tpu.vector_store %arg14[%c0_136, %c0_137, %c0_138], %357 {strides = array<i32>} : memref<2x1x32xf32, #tpu.memory_space<vmem>>, vector<2x1x32xf32>,
    return
  }
  func.func @transform_0(%arg0: i32) -> (i32, i32, i32) {
    %c0_i32 = arith.constant 0 : i32
    %c0_i32_0 = arith.constant 0 : i32
    %c0_i32_1 = arith.constant 0 : i32
    return %arg0, %c0_i32, %c0_i32_0 : i32, i32, i32
  }
  func.func @transform_1(%arg0: i32) -> (i32, i32, i32) {
    %c0_i32 = arith.constant 0 : i32
    %c0_i32_0 = arith.constant 0 : i32
    %c0_i32_1 = arith.constant 0 : i32
    %c0_i32_2 = arith.constant 0 : i32
    return %c0_i32, %c0_i32_0, %c0_i32_1 : i32, i32, i32
  }
  func.func @transform_2(%arg0: i32) -> (i32, i32, i32) {
    %c0_i32 = arith.constant 0 : i32
    %c0_i32_0 = arith.constant 0 : i32
    %c0_i32_1 = arith.constant 0 : i32
    %c0_i32_2 = arith.constant 0 : i32
    return %c0_i32, %c0_i32_0, %c0_i32_1 : i32, i32, i32
  }
  func.func @transform_3(%arg0: i32) -> (i32, i32, i32) {
    %c0_i32 = arith.constant 0 : i32
    %c0_i32_0 = arith.constant 0 : i32
    %c0_i32_1 = arith.constant 0 : i32
    %c0_i32_2 = arith.constant 0 : i32
    return %c0_i32, %c0_i32_0, %c0_i32_1 : i32, i32, i32
  }
  func.func @transform_4(%arg0: i32) -> (i32, i32, i32) {
    %c0_i32 = arith.constant 0 : i32
    %c0_i32_0 = arith.constant 0 : i32
    %c0_i32_1 = arith.constant 0 : i32
    %c0_i32_2 = arith.constant 0 : i32
    return %c0_i32, %c0_i32_0, %c0_i32_1 : i32, i32, i32
  }
  func.func @transform_5(%arg0: i32) -> (i32, i32, i32) {
    %c0_i32 = arith.constant 0 : i32
    %c0_i32_0 = arith.constant 0 : i32
    %c0_i32_1 = arith.constant 0 : i32
    %c0_i32_2 = arith.constant 0 : i32
    return %c0_i32, %c0_i32_0, %c0_i32_1 : i32, i32, i32
  }
  func.func @transform_6(%arg0: i32) -> (i32, i32, i32) {
    %c0_i32 = arith.constant 0 : i32
    %c0_i32_0 = arith.constant 0 : i32
    %c0_i32_1 = arith.constant 0 : i32
    %c0_i32_2 = arith.constant 0 : i32
    return %c0_i32, %c0_i32_0, %c0_i32_1 : i32, i32, i32
  }
  func.func @transform_7(%arg0: i32) -> (i32, i32, i32) {
    %c0_i32 = arith.constant 0 : i32
    %c0_i32_0 = arith.constant 0 : i32
    %c0_i32_1 = arith.constant 0 : i32
    %c0_i32_2 = arith.constant 0 : i32
    return %c0_i32, %c0_i32_0, %c0_i32_1 : i32, i32, i32
  }
  func.func @transform_8(%arg0: i32) -> (i32, i32, i32) {
    %c0_i32 = arith.constant 0 : i32
    %c0_i32_0 = arith.constant 0 : i32
    %c0_i32_1 = arith.constant 0 : i32
    %c0_i32_2 = arith.constant 0 : i32
    return %c0_i32, %c0_i32_0, %c0_i32_1 : i32, i32, i32
  }
  func.func @transform_9(%arg0: i32) -> (i32, i32, i32) {
    %c0_i32 = arith.constant 0 : i32
    %c0_i32_0 = arith.constant 0 : i32
    %c0_i32_1 = arith.constant 0 : i32
    %c0_i32_2 = arith.constant 0 : i32
    return %c0_i32, %c0_i32_0, %c0_i32_1 : i32, i32, i32
  }
  func.func @transform_10(%arg0: i32) -> (i32, i32, i32) {
    %c0_i32 = arith.constant 0 : i32
    %c0_i32_0 = arith.constant 0 : i32
    %c0_i32_1 = arith.constant 0 : i32
    %c0_i32_2 = arith.constant 0 : i32
    return %c0_i32, %c0_i32_0, %c0_i32_1 : i32, i32, i32
  }
  func.func @transform_11(%arg0: i32) -> (i32, i32, i32) {
    %c0_i32 = arith.constant 0 : i32
    %c0_i32_0 = arith.constant 0 : i32
    %c0_i32_1 = arith.constant 0 : i32
    %c0_i32_2 = arith.constant 0 : i32
    return %c0_i32, %c0_i32_0, %c0_i32_1 : i32, i32, i32
  }
  func.func @transform_12(%arg0: i32) -> (i32, i32, i32) {
    %c0_i32 = arith.constant 0 : i32
    %c0_i32_0 = arith.constant 0 : i32
    %c0_i32_1 = arith.constant 0 : i32
    %c0_i32_2 = arith.constant 0 : i32
    return %c0_i32, %c0_i32_0, %c0_i32_1 : i32, i32, i32
  }
  func.func @transform_13(%arg0: i32) -> (i32, i32, i32) {
    %c0_i32 = arith.constant 0 : i32
    %c0_i32_0 = arith.constant 0 : i32
    %c0_i32_1 = arith.constant 0 : i32
    return %arg0, %c0_i32, %c0_i32_0 : i32, i32, i32
  }
}

</mosaic_0001>

<bundles_post_ra>
// kernel: tpu_custom_call.1
= control target key start
LH: loop header
LB: loop body
LE: loop exit
PB: predicated region body
PF: predicated region fallthrough
CT: control target
= control target key end

     0   :  { %s3748_s0 = inlined_call_operand.hbm [shape: bf16[4,8,32], index: 0, kind: input, shape index: {}]   ;;  %s3749_s1 = inlined_call_operand.vmem [shape: bf16[2,32,96], index: 1, kind: input, shape index: {}]   ;;  %s3750_s2 = inlined_call_operand.hbm [shape: f32[2,1,96], index: 2, kind: input, shape index: {}]   ;;  %s3751_s3 = inlined_call_operand.vmem [shape: bf16[2,32,32], index: 3, kind: input, shape index: {}]   ;;  %s3752_s4 = inlined_call_operand.vmem [shape: f32[2,1,32], index: 4, kind: input, shape index: {}]   ;;  %s3753_s5 = inlined_call_operand.hbm [shape: f32[2,1,32], index: 5, kind: input, shape index: {}]   ;;  %s3754_s6 = inlined_call_operand.vmem [shape: f32[2,1,32], index: 6, kind: input, shape index: {}]   ;;  %s3755_s7 = inlined_call_operand.vmem [shape: bf16[2,32,64], index: 7, kind: input, shape index: {}]   ;;  %s3756_s8 = inlined_call_operand.vmem [shape: f32[2,1,64], index: 8, kind: input, shape index: {}]   ;;  %s3757_s9 = inlined_call_operand.vmem [shape: bf16[2,64,32], index: 9, kind: input, shape index: {}]   ;;  %s3758_s10 = inlined_call_operand.vmem [shape: f32[2,1,32], index: 10, kind: input, shape index: {}]   ;;  %s3759_s11 = inlined_call_operand.hbm [shape: f32[2,1,32], index: 11, kind: input, shape index: {}]   ;;  %s3760_s12 = inlined_call_operand.vmem [shape: f32[2,1,32], index: 12, kind: input, shape index: {}]   ;;  %s3761_s13 = inlined_call_operand.hbm [shape: f32[4,1,32], index: 13, kind: output, shape index: {}]  }
   0x1   :  { %3781 = sst [smem:[#allocation19_spill]] %s3750_s2 }
   0x2   :  { %3782 = sst [smem:[#allocation20_spill]] %s3753_s5 }
   0x3   :  { %3783 = sst [smem:[#allocation21_spill]] %s3759_s11 }
   0x4   :  { %18 = vsyncpa [#allocation3], 0 }
   0x5   :  { %20 = vsyncpa [#allocation3 + $0x1], 0 }
   0x6   :  { %21 = vsyncpa [#allocation6], 0 }
   0x7   :  { %22 = vsyncpa [#allocation9], 0 }
   0x8   :  { %23 = vsyncpa [#allocation4], 0 }
   0x9   :  { %25 = vsyncpa [#allocation4 + $0x1], 0  ;;  %s3142_s25 = smov 0   ;;  %s3144_s26 = smov 0  }
   0xa   :  { %s3146_s27 = smov 0   ;;  %s3148_s28 = smov 0  }
   0xb LB: > { %3784 = sst [smem:[#allocation15_spill]] %s3034_s25  ;;  %s3163_s29 = sadd.s32 4294967295, %s3046_s28   ;;  %s3046_s28 = sphi %s3148_s28, %s3813_s28   ;;  %s3042_s27 = sphi %s3146_s27, %s3810_s27   ;;  %s3038_s26 = sphi %s3144_s26, %s3812_s26   ;;  %s3034_s25 = sphi %s3142_s25, %s3811_s25  }
   0xc   : > { %3785 = sst [smem:[#allocation16_spill]] %s3042_s27  ;;  %s2434_s30 = sadd.s32 4294967294, %s3046_s28  }
   0xd   : > { %p51_p0 = scmp.ne.s32.totalorder %s3038_s26, %s3034_s25  ;;  %p52_p1 = scmp.eq.s32.totalorder %s3163_s29, 0 }
   0xe   : > { %p327_p2 = scmp.eq.s32.totalorder %s3163_s29, 1  ;;  %p333_p3 = scmp.eq.s32.totalorder %s2434_s30, 1 }
   0xf   : > { %p3172_p4 = por %p52_p1, %p51_p0  ;;  %p2435_p5 = scmp.ge.s32.totalorder %s3046_s28, 1 }
  0x10   : > { %p3177_p6 = por %p333_p3, %p51_p0  ;;  %p340_p7 = scmp.lt.s32.totalorder %s3046_s28, 3 }
  0x11   : > { %s3789_s2 = sld [smem:[#allocation19_spill]]  ;;  %s3048_s20 = smov [#allocation5]  }
  0x12   : > { %s3787_s15 = scalar_select %p3177_p6, 1, 0 }
  0x13   : > { %p3185_p8 = pnand %p2435_p5, %p340_p7  ;;  %s356_s21 = sshll.u32 %s3048_s20, 4  ;;  %s357_s21 = int_to_ptr.vmem [resolvable:$true] %s356_s21 }
  0x14   : > { %3788 = sst [smem:[#allocation17_spill]] %s3787_s15  ;;  %s3049_s16 = smov 16  }
  0x15   : > { %p2640_p9 = pneg %p3185_p8  ;;  %s3792_s5 = sld [smem:[#allocation20_spill]] }
  0x16   : > { %s3050_s17 = smov 1   ;;  %s3051_s20 = smov [#allocation7]  }
  0x17   : > { %s354_s18 = sshll.u32 %s3789_s2, 4  ;;  %p3193_p10 = pnand %p2640_p9, %p52_p1  ;;  %s355_s18 = int_to_ptr.hbm [resolvable:$true] %s354_s18 }
  0x18   : > { %s376_s2 = sshll.u32 %s3051_s20, 4  ;;  %s3793_s11 = sld [smem:[#allocation21_spill]]  ;;  %s377_s2 = int_to_ptr.vmem [resolvable:$true] %s376_s2 }
  0x19   : > { %2643 = dma.hbm_to_vmem [thread:$0]  (!%p3193_p10), %s355_s18, 32, %s357_s21, [#allocation6], %s3049_s16, %s3049_s16, %s3050_s17  }
  0x1a   : > { %s3052_s24 = smov [#allocation8]   ;;  %s3209_s18 = sadd.s32 1, %s3046_s28  }
  0x1b   : > { %s374_s30 = sshll.u32 %s3792_s5, 4  ;;  %s405_s5 = sshll.u32 %s3052_s24, 4  ;;  %s375_s30 = int_to_ptr.hbm [resolvable:$true] %s374_s30  ;;  %s406_s5 = int_to_ptr.vmem [resolvable:$true] %s405_s5 }
  0x1c   : > { %2646 = dma.hbm_to_vmem [thread:$0]  (!%p3193_p10), %s375_s30, 32, %s377_s2, [#allocation6], %s3049_s16, %s3049_s16, %s3050_s17  }
  0x1d   : > { %s35_s21 = ssub.s32 %s3046_s28, %s3209_s18  ;;  %s38_s20 = sadd.s32 1, %s3042_s27 }
  0x1e   : > { %s403_s23 = sshll.u32 %s3793_s11, 4  ;;  %p36_p12 = scmp.eq.s32.totalorder %s35_s21, 0  ;;  %s404_s23 = int_to_ptr.hbm [resolvable:$true] %s403_s23 }
  0x1f   : > { %2649 = dma.hbm_to_vmem [thread:$0]  (!%p3193_p10), %s404_s23, 32, %s406_s5, [#allocation9], %s3049_s16, %s3049_s16, %s3050_s17  }
  0x20   : > { %p45_p13 = scmp.ne.s32.totalorder %s3042_s27, %s3038_s26  ;;  %p46_p0 = scmp.eq.s32.totalorder %s3046_s28, 0 }
  0x21   : > { %p2661_p3 = scmp.lt.s32.totalorder %s3046_s28, 2  ;;  %s422_s15 = sand.u32 1, %s3042_s27  }
  0x22   : > { %s3221_s25 = scalar_select %p36_p12, %s3042_s27, %s38_s20  }
  0x23   : > { %p47_p5 = por %p46_p0, %p45_p13  ;;  %p3225_p7 = por %p327_p2, %p45_p13 }
  0x24   : > { %3794 = sst [smem:[#allocation18_spill]] %s3221_s25  ;;  %s2602_s30 = sshll.u32 %s3046_s28, 3 }
  0x25   : > { %s2440_s22 = sshll.u32 %s422_s15, 3  ;;  %s431_s16 = scalar_lea.hbm %s3748_s0, %s2602_s30 }
  0x26   : > { %s432_s17 = sshll.u32 %s431_s16, 4  ;;  %s426_s23 = scalar_lea.vmem [#allocation2], %s2440_s22  ;;  %s433_s17 = int_to_ptr.hbm [resolvable:$true] %s432_s17 }
  0x27   : > { %s434_s21 = sshll.u32 %s426_s23, 4  ;;  %p3236_p9 = pnand %p2661_p3, %p47_p5  ;;  %s435_s21 = int_to_ptr.vmem [resolvable:$true] %s434_s21 }
  0x28   : > { %s423_s11 = scalar_lea.sflag [#allocation3], %s422_s15  ;;  %s2942_s25 = sshra.s32 %s433_s17, 4  ;;  %s2943_s25 = int_to_ptr.hbm [resolvable:$true] %s2942_s25 }
  0x29   : > { %s2944_s27 = scalar_lea.hbm %s2943_s25, 8  ;;  %p2946_p10 = pneg %p3236_p9 }
  0x2a   : > { %p2945_p2 = scmp.ne.s32.totalorder %s2943_s25, %s2944_s27  ;;  %s2949_s24 = scalar_lea.hbm %s3748_s0, 16 }
  0x2b   : > { %p2950_p0 = scmp.lt.s32.totalorder %s2943_s25, %s3748_s0  ;;  %p2951_p3 = scmp.lt.s32.totalorder %s2949_s24, %s2944_s27 }
  0x2c   : > { %p2947_p12 = pnand %p2946_p10, %p2945_p2 }
  0x2d   : > { %p2952_p5 = por %p2951_p3, %p2950_p0 }
  0x2e   : > { %p2948_p13 = pneg %p2947_p12 }
  0x30   : > { %p2953_p11 = pnand %p2952_p5, %p2948_p13 }
  0x32   : > { %2956 = shalt.err (!%p2953_p11)
}
  0x33   : > { %s3053_s15 = smov 64   ;;  %s3054_s23 = smov 4  }
  0x34   : > { %2653 = dma.hbm_to_vmem [thread:$0]  (!%p3236_p9), %s433_s17, 128, %s435_s21, %s423_s11, %s3053_s15, %s3053_s15, %s3054_s23  }
  0x35   : > { %446 = sbr.rel (%p3185_p8) target bundleno = 4003 (0xfa3), region = 72  ;;  %s3253_s30 = sand.u32 (!%p3185_p8), 1, %s3038_s26  }
  0x36   : > { %s2444_s22 = sshll.u32 (!%p3185_p8), %s3253_s30, 3  ;;  %s449_s25 = scalar_lea.sflag (!%p3185_p8), [#allocation3], %s3253_s30 }
  0x37   : > { %s3257_s27 = scalar_lea.vmem (!%p3185_p8), [#allocation2], %s2444_s22 }
  0x3a   : > { %3017 = dma.done.wait (%p3172_p4), %s449_s25, 128  }
  0x3b   : > { %3019 = vsyncadd (%p3172_p4), %s449_s25, 4294967168 }
  0x3c   : > { %3021 = dma.done.wait (%p52_p1), [#allocation6], 64  }
  0x3d   : > { %3023 = vsyncadd (%p52_p1), [#allocation6], 4294967232 }
  0x3e   : > { %3025 = dma.done.wait (%p52_p1), [#allocation9], 32  }
  0x3f   : > { %3027 = vsyncadd (%p52_p1), [#allocation9], 4294967264  ;;  %v2605_v0 = vld [vmem:[%s3749_s1 + $0x8] sm:$0xff]  ;;  %v2604_v1 = vld [vmem:[%s3749_s1] sm:$0xff]  ;;  %vm559_vm0 = vcmask 261120   ;;  %s3055_s21 = smov 120  }
  0x40   : > { %569 = vmatpush.bf16.msra.mxu0 %v2605_v0  ;;  %v2603_v2 = vld [vmem:[%s3257_s27] sm:$0xff]  ;;  %v2752_v3 = vld [vmem:[#allocation5] ss:$0 sm:$0xff]  ;;  %s3056_s20 = smov 88   ;;  %s3057_s24 = smov 96   ;;  %vm584_vm1 = vcmask 64512  }
  0x41   : > { %s3058_s5 = smov 112   ;;  %s3059_s16 = smov 80   ;;  %vm683_vm2 = vcmask 1043456  }
  0x42   : > { %s3779_s15 = smov 72   ;;  %s3777_s23 = smov 104  }
  0x43   : > { %s3769_s22 = smov 56   ;;  %s3772_s25 = smov 64  }
  0x44   : > { %570 = vmatpush.bf16.msra.mxu0 %v2604_v1  ;;  %s3765_s11 = smov 40   ;;  %s3767_s19 = smov 48  }
  0x45   : > { %s3771_s17 = smov 8   ;;  %s3775_s14 = smov 16  }
  0x47   : > { %2461 = vmatmul.msk.bf16.vlgmr.msra.gmra.mxu0 %vm559_vm0, %v2603_v2 }
  0xc4   : > { %v572_v4 = vpop.f32.mrf.mxu0 }
  0xc5   : > { %v573_v5 = vadd.f32 %v2752_v3, %v572_v4 }
  0xc7   : > { %v577_v6 = vpack.c.bf16 %v573_v5, %v573_v5 }
  0xc9   : > { %v580_v7 = vunpack.c.l.b16 %v577_v6 }
  0xcb   : > { %v3279_v8 = vpack.c.b16 %v580_v7, %v580_v7 }
  0xcc   : > { %v574_v9 = vpop.f32.mrf.mxu0 }
  0xcd   : > { %v575_v10 = vadd.f32 %v2752_v3, %v574_v9  ;;  %721 = vrot.lane.b32.xlu2 %v3279_v8, %s3055_s21  ;;  %723 = vrot.lane.b32.xlu1 %v3279_v8, %s3056_s20 }
  0xce   : > { %582 = vrot.lane.b32.xlu0 %v3279_v8, %s3057_s24 }
  0xcf   : > { %v578_v11 = vpack.c.bf16 %v575_v10, %v575_v10 }
  0xd1   : > { %v605_v12 = vunpack.c.l.b16 %v578_v11 }
  0xd3   : > { %v3287_v13 = vpack.c.b16 %v605_v12, %v605_v12 }
  0xd5   : > { %744 = vrot.lane.b32.xlu2 %v3287_v13, %s3055_s21  ;;  %746 = vrot.lane.b32.xlu1 %v3287_v13, %s3056_s20 }
  0xd6   : > { %607 = vrot.lane.b32.xlu0 %v3287_v13, %s3057_s24 }
  0xdd   : > { %859 = vrot.lane.b32.xlu2 %v3279_v8, %s3058_s5  ;;  %884 = vrot.lane.b32.xlu1 %v3287_v13, %s3059_s16 }
  0xde   : > { %861 = vrot.lane.b32.xlu0 %v3279_v8, %s3059_s16 }
  0xe5   : > { %1022 = vrot.lane.b32.xlu2 %v3287_v13, %s3779_s15  ;;  %999 = vrot.lane.b32.xlu1 %v3279_v8, %s3779_s15  ;;  %s3805_s15 = smov 24  }
  0xe6   : > { %882 = vrot.lane.b32.xlu0 %v3287_v13, %s3058_s5 }
  0xed   : > { %1020 = vrot.lane.b32.xlu1 %v3287_v13, %s3777_s23 }
  0xee   : > { %997 = vrot.lane.b32.xlu0 %v3279_v8, %s3777_s23  ;;  %s2448_s23 = sshll.u32 %s3253_s30, 1 }
 0x127   : > { %v722_v14 = vpop.permute.xlu2 %721 }
 0x12f   : > { %v745_v19 = vpop.permute.xlu2 %744 }
 0x137   : > { %v860_v24 = vpop.permute.xlu2 %859 }
 0x13f   : > { %v724_v15 = vpop.permute.xlu1 %723  ;;  %v1023_v29 = vpop.permute.xlu2 %1022 }
 0x140   : > { %v583_v16 = vpop.permute.xlu0 %582  ;;  %v729_v17 = vsel %vm584_vm1, %v724_v15, 0  ;;  %v1028_v32 = vsel %vm584_vm1, %v1023_v29, 0 }
 0x141   : > { %v589_v18 = vsel %vm584_vm1, %v583_v16, 0  ;;  %738 = vmatpush.bf16.xpose.msrb.mxu0 %v729_v17 }
 0x142   : > { %598 = vmatpush.bf16.xpose.msra.mxu1 %v589_v18 }
 0x147   : > { %v747_v20 = vpop.permute.xlu1 %746 }
 0x148   : > { %v608_v21 = vpop.permute.xlu0 %607  ;;  %2466 = vmatmul.msk.bf16.vlgmr.msrb.gmra.mxu0 %vm584_vm1, %v722_v14  ;;  %v752_v22 = vsel %vm584_vm1, %v747_v20, 0 }
 0x149   : > { %2462 = vmatmul.msk.bf16.vlgmr.msra.gmra.mxu1 %vm584_vm1, %v577_v6  ;;  %v613_v23 = vsel %vm584_vm1, %v608_v21, 0 }
 0x14a   : > { %622 = vmatpush.bf16.xpose.msra.mxu2 %v613_v23  ;;  %761 = vmatpush.bf16.xpose.msrb.mxu1 %v752_v22 }
 0x14f   : > { %v885_v25 = vpop.permute.xlu1 %884 }
 0x150   : > { %v890_v26 = vsel %vm584_vm1, %v885_v25, 0  ;;  %v862_v27 = vpop.permute.xlu0 %861 }
 0x151   : > { %v867_v28 = vsel %vm584_vm1, %v862_v27, 0  ;;  %2463 = vmatmul.msk.bf16.vlgmr.msra.gmra.mxu2 %vm584_vm1, %v578_v11 }
 0x152   : > { %899 = vmatpush.bf16.xpose.msra.mxu1 %v890_v26  ;;  %876 = vmatpush.bf16.xpose.msra.mxu0 %v867_v28 }
 0x157   : > { %v1000_v30 = vpop.permute.xlu1 %999 }
 0x158   : > { %v1005_v31 = vsel %vm584_vm1, %v1000_v30, 0  ;;  %v883_v33 = vpop.permute.xlu0 %882 }
 0x159   : > { %2467 = vmatmul.msk.bf16.vlgmr.msrb.gmra.mxu1 %vm584_vm1, %v745_v19  ;;  %2470 = vmatmul.msk.bf16.vlgmr.msra.gmra.mxu0 %vm584_vm1, %v860_v24 }
 0x15a   : > { %1037 = vmatpush.bf16.xpose.msrb.mxu1 %v1028_v32  ;;  %1014 = vmatpush.bf16.xpose.msrb.mxu0 %v1005_v31 }
 0x15f   : > { %v1021_v35 = vpop.permute.xlu1 %1020 }
 0x160   : > { %v998_v34 = vpop.permute.xlu0 %997 }
 0x169   : > { %2471 = vmatmul.msk.bf16.vlgmr.msra.gmra.mxu1 %vm584_vm1, %v883_v33  ;;  %2474 = vmatmul.msk.bf16.vlgmr.msrb.gmra.mxu0 %vm584_vm1, %v998_v34 }
 0x179   : > { %2475 = vmatmul.msk.bf16.vlgmr.msrb.gmra.mxu1 %vm584_vm1, %v1021_v35 }
 0x1c5   : > { %v740_v36 = vpop.f32.mrf.mxu0 }
 0x1c6   : > { %v600_v37 = vpop.f32.mrf.mxu1  ;;  %v767_v38 = vsel %vm584_vm1, %v740_v36, -inf }
 0x1c7   : > { %768 = vmax.xlane.f32.xlu1 %v767_v38  ;;  %v628_v39 = vsel %vm584_vm1, %v600_v37, -inf }
 0x1c8   : > { %629 = vmax.xlane.f32.xlu2 %v628_v39 }
 0x1cd   : > { %v742_v40 = vpop.f32.mrf.mxu0 }
 0x1ce   : > { %v602_v41 = vpop.f32.mrf.mxu1 }
 0x1d4   : > { %v624_v42 = vpop.f32.mrf.mxu2 }
 0x1d5   : > { %v631_v43 = vsel %vm584_vm1, %v624_v42, -inf }
 0x1d6   : > { %v763_v44 = vpop.f32.mrf.mxu1  ;;  %632 = vmax.xlane.f32.xlu0 %v631_v43  ;;  %v3330_v45 = vpop.f32.mrf.mxu0 }
 0x1d7   : > { %v770_v46 = vsel %vm584_vm1, %v763_v44, -inf  ;;  %v905_v58 = vsel %vm584_vm1, %v3330_v45, -inf }
 0x1d8   : > { %771 = vmax.xlane.f32.xlu2 %v770_v46 }
 0x1dc   : > { %v626_v47 = vpop.f32.mrf.mxu2 }
 0x1de   : > { %v765_v48 = vpop.f32.mrf.mxu1  ;;  %v880_v49 = vpop.f32.mrf.mxu0 }
 0x1e0   : > { %838 = vrot.lane.b32.xlu1 %v3287_v13, %s3769_s22 }
 0x1e6   : > { %v3335_v50 = vpop.f32.mrf.mxu1  ;;  %v3337_v51 = vpop.f32.mrf.mxu0 }
 0x1e7   : > { %v908_v52 = vsel %vm584_vm1, %v3335_v50, -inf  ;;  %v1043_v59 = vsel %vm584_vm1, %v3337_v51, -inf }
 0x1e8   : > { %909 = vmax.xlane.f32.xlu0 %v908_v52 }
 0x1ee   : > { %v903_v53 = vpop.f32.mrf.mxu1  ;;  %v1018_v54 = vpop.f32.mrf.mxu0 }
 0x1f0   : > { %678 = vrot.lane.b32.xlu2 %v3279_v8, %s3772_s25 }
 0x1f6   : > { %v1039_v55 = vpop.f32.mrf.mxu1 }
 0x1f7   : > { %v1046_v56 = vsel %vm584_vm1, %v1039_v55, -inf }
 0x1f8   : > { %1047 = vmax.xlane.f32.xlu0 %v1046_v56 }
 0x1fe   : > { %v1041_v57 = vpop.f32.mrf.mxu1 }
 0x20c   : > { %700 = vrot.lane.b32.xlu0 %v3287_v13, %s3772_s25 }
 0x219   : > { %906 = vmax.xlane.f32.xlu2 %v905_v58 }
 0x221   : > { %1044 = vmax.xlane.f32.xlu2 %v1043_v59 }
 0x239   : > { %817 = vrot.lane.b32.xlu2 %v3279_v8, %s3769_s22  ;;  %s510_s22 = scalar_lea.vmem [#allocation10], %s2448_s23 }
 0x23a   : > { %v769_v60 = vpop.xlane.xlu1 %768 }
 0x23b   : > { %v773_v61 = vsub.f32 %v740_v36, %v769_v60  ;;  %v630_v62 = vpop.xlane.xlu2 %629 }
 0x23c   : > { %v634_v63 = vsub.f32 %v600_v37, %v630_v62 }
 0x23d   : > { %v775_v0 = vmul.f32 1.442695, %v773_v61 }
 0x23e   : > { %v636_v1 = vmul.f32 1.442695, %v634_v63 }
 0x23f   : > { %2768 = vpow2.f32 %v775_v0 }
 0x240   : > { %2770 = vpow2.f32 %v636_v1 }
 0x245   : > { %v3352_v2 = vpop.eup %2768 }
 0x246   : > { %v3354_v3 = vpop.eup %2770  ;;  %v779_v4 = vsel %vm584_vm1, %v3352_v2, 0.0 }
 0x247   : > { %v640_v5 = vsel %vm584_vm1, %v3354_v3, 0.0  ;;  %780 = vadd.xlane.f32.xlu0 %v779_v4 }
 0x248   : > { %641 = vadd.xlane.f32.xlu1 %v640_v5 }
 0x249   : > { %v633_v6 = vpop.xlane.xlu0 %632 }
 0x24a   : > { %v635_v7 = vsub.f32 %v624_v42, %v633_v6 }
 0x24b   : > { %v772_v9 = vpop.xlane.xlu2 %771 }
 0x24c   : > { %v638_v10 = vmul.f32 1.442695, %v635_v7  ;;  %v774_v11 = vsub.f32 %v763_v44, %v772_v9 }
 0x24e   : > { %2772 = vpow2.f32 %v638_v10  ;;  %v777_v12 = vmul.f32 1.442695, %v774_v11 }
 0x250   : > { %2774 = vpow2.f32 %v777_v12 }
 0x252   : > { %v839_v44 = vpop.permute.xlu1 %838 }
 0x253   : > { %v679_v14 = vpop.permute.xlu2 %678  ;;  %v844_v11 = vsel %vm683_vm2, %v839_v44, 0 }
 0x254   : > { %v3360_v15 = vpop.eup %2772  ;;  %v685_v16 = vsel %vm683_vm2, %v679_v14, 0 }
 0x255   : > { %694 = vmatpush.bf16.msra.mxu3 %v685_v16  ;;  %v643_v17 = vsel %vm584_vm1, %v3360_v15, 0.0 }
 0x256   : > { %644 = vadd.xlane.f32.xlu1 %v643_v17  ;;  %v3365_v18 = vpop.eup %2774 }
 0x257   : > { %v782_v19 = vsel %vm584_vm1, %v3365_v18, 0.0 }
 0x25b   : > { %v910_v20 = vpop.xlane.xlu0 %909 }
 0x25c   : > { %v912_v30 = vsub.f32 %v3335_v50, %v910_v20 }
 0x25e   : > { %783 = vadd.xlane.f32.xlu1 %v782_v19  ;;  %v915_v32 = vmul.f32 1.442695, %v912_v30 }
 0x26b   : > { %v1048_v21 = vpop.xlane.xlu0 %1047 }
 0x26c   : > { %v1050_v22 = vsub.f32 %v1039_v55, %v1048_v21 }
 0x26e   : > { %v1053_v23 = vmul.f32 1.442695, %v1050_v22 }
 0x270   : > { %2776 = vpow2.f32 %v1053_v23 }
 0x276   : > { %v3369_v24 = vpop.eup %2776 }
 0x277   : > { %v1058_v25 = vsel %vm584_vm1, %v3369_v24, 0.0 }
 0x278   : > { %1059 = vadd.xlane.f32.xlu2 %v1058_v25 }
 0x27e   : > { %v701_v26 = vpop.permute.xlu0 %700 }
 0x27f   : > { %v706_v27 = vsel %vm683_vm2, %v701_v26, 0 }
 0x280   : > { %715 = vmatpush.bf16.msrb.mxu3 %v706_v27 }
 0x28c   : > { %v907_v28 = vpop.xlane.xlu2 %906 }
 0x28d   : > { %v911_v29 = vsub.f32 %v3330_v45, %v907_v28 }
 0x28f   : > { %v913_v31 = vmul.f32 1.442695, %v911_v29 }
 0x291   : > { %2778 = vpow2.f32 %v913_v31 }
 0x292   : > { %2780 = vpow2.f32 %v915_v32 }
 0x294   : > { %v1045_v33 = vpop.xlane.xlu2 %1044 }
 0x295   : > { %v1049_v34 = vsub.f32 %v3337_v51, %v1045_v33 }
 0x297   : > { %v3377_v35 = vpop.eup %2778  ;;  %v1051_v36 = vmul.f32 1.442695, %v1049_v34 }
 0x298   : > { %v917_v37 = vsel %vm584_vm1, %v3377_v35, 0.0  ;;  %v3381_v39 = vpop.eup %2780 }
 0x299   : > { %2782 = vpow2.f32 %v1051_v36  ;;  %918 = vadd.xlane.f32.xlu1 %v917_v37  ;;  %v920_v43 = vsel %vm584_vm1, %v3381_v39, 0.0 }
 0x29c   : > { %v818_v38 = vpop.permute.xlu2 %817 }
 0x29d   : > { %v823_v40 = vsel %vm683_vm2, %v818_v38, 0 }
 0x29e   : > { %832 = vmatpush.bf16.msrb.mxu2 %v823_v40 }
 0x29f   : > { %v3384_v41 = vpop.eup %2782 }
 0x2a0   : > { %v1055_v42 = vsel %vm584_vm1, %v3384_v41, 0.0 }
 0x2a1   : > { %1056 = vadd.xlane.f32.xlu0 %v1055_v42  ;;  %921 = vadd.xlane.f32.xlu1 %v920_v43 }
 0x2b5   : > { %1114 = vrot.lane.b32.xlu0 %v3287_v13, %s3765_s11 }
 0x2ba   : > { %955 = vrot.lane.b32.xlu1 %v3279_v8, %s3767_s19  ;;  %v781_v45 = vpop.xlane.xlu0 %780 }
 0x2bb   : > { %v642_v46 = vpop.xlane.xlu1 %641  ;;  %2784 = vrcp.f32 %v781_v45  ;;  %v796_v55 = vand.u32 2147483648, %v781_v45  ;;  %v794_v57 = vand.u32 2147483647, %v781_v45  ;;  %vm790_vm5 = vweird.f32 %v781_v45 }
 0x2bc   : > { %2786 = vrcp.f32 %v642_v46  ;;  %v657_v53 = vand.u32 2147483648, %v642_v46  ;;  %v655_v58 = vand.u32 2147483647, %v642_v46  ;;  %vm651_vm6 = vweird.f32 %v642_v46 }
 0x2bd   : > { %vm795_vm9 = vcmp.eq.f32.partialorder %v794_v57, 8.507059e+37 }
 0x2be   : > { %v658_v62 = vor.u32 1.1754944e-38, %v657_v53  ;;  %vm656_vm10 = vcmp.eq.f32.partialorder %v655_v58, 8.507059e+37 }
 0x2c1   : > { %v2785_v47 = vpop.eup %2784 }
 0x2c2   : > { %v2787_v48 = vpop.eup %2786  ;;  %v786_v49 = vmul.f32 %v2785_v47, %v781_v45  ;;  %976 = vrot.lane.b32.xlu1 %v3287_v13, %s3767_s19  ;;  %vm791_vm3 = vweird.f32 %v2785_v47  ;;  %v797_v13 = vor.u32 1.1754944e-38, %v796_v55  ;;  %s3802_s19 = smov 40  }
 0x2c3   : > { %v647_v50 = vmul.f32 %v2787_v48, %v642_v46  ;;  %vm652_vm4 = vweird.f32 %v2787_v48  ;;  %vm792_vm7 = vmor %vm790_vm5, %vm791_vm3 }
 0x2c4   : > { %v787_v51 = vsub.f32 1.0, %v786_v49  ;;  %vm653_vm8 = vmor %vm651_vm6, %vm652_vm4 }
 0x2c5   : > { %v648_v52 = vsub.f32 1.0, %v647_v50 }
 0x2c6   : > { %v788_v54 = vmul.f32 %v2785_v47, %v787_v51 }
 0x2c7   : > { %v649_v56 = vmul.f32 %v2787_v48, %v648_v52 }
 0x2c8   : > { %v789_v59 = vadd.f32 %v2785_v47, %v788_v54 }
 0x2c9   : > { %v645_v60 = vpop.xlane.xlu1 %644  ;;  %v650_v61 = vadd.f32 %v2787_v48, %v649_v56 }
 0x2ca   : > { %2788 = vrcp.f32 %v645_v60  ;;  %1093 = vrot.lane.b32.xlu1 %v3279_v8, %s3765_s11  ;;  %v793_v0 = vsel %vm792_vm7, %v2785_v47, %v789_v59  ;;  %v671_v16 = vand.u32 2147483648, %v645_v60  ;;  %vm665_vm12 = vweird.f32 %v645_v60  ;;  %s3774_s11 = smov 24  }
 0x2cb   : > { %v654_v63 = vsel %vm653_vm8, %v2787_v48, %v650_v61  ;;  %v798_v4 = vsel %vm795_vm9, %v797_v13, %v793_v0 }
 0x2cc   : > { %v659_v1 = vsel %vm656_vm10, %v658_v62, %v654_v63  ;;  %v813_v6 = vmul.f32 %v3352_v2, %v798_v4  ;;  %v672_v20 = vor.u32 1.1754944e-38, %v671_v16 }
 0x2cd   : > { %v674_v5 = vmul.f32 %v3354_v3, %v659_v1  ;;  %v669_v3 = vand.u32 2147483647, %v645_v60 }
 0x2ce   : > { %v815_v9 = vpack.c.bf16 %v813_v6, %v813_v6 }
 0x2cf   : > { %v676_v7 = vpack.c.bf16 %v674_v5, %v674_v5  ;;  %vm670_vm14 = vcmp.eq.f32.partialorder %v669_v3, 8.507059e+37 }
 0x2d0   : > { %v2789_v10 = vpop.eup %2788  ;;  %2468 = vmatmul.msk.bf16.vlgmr.msrb.gmra.mxu2 %vm584_vm1, %v815_v9 }
 0x2d1   : > { %v661_v12 = vmul.f32 %v2789_v10, %v645_v60  ;;  %2464 = vmatmul.msk.bf16.vlgmr.msra.gmra.mxu3 %vm584_vm1, %v676_v7  ;;  %v784_v14 = vpop.xlane.xlu1 %783  ;;  %vm666_vm11 = vweird.f32 %v2789_v10 }
 0x2d2   : > { %2790 = vrcp.f32 %v784_v14  ;;  %853 = vmatpush.bf16.msra.mxu3 %v844_v11  ;;  %vm667_vm13 = vmor %vm665_vm12, %vm666_vm11  ;;  %v810_v30 = vand.u32 2147483648, %v784_v14  ;;  %vm804_vm3 = vweird.f32 %v784_v14  ;;  %v808_v31 = vand.u32 2147483647, %v784_v14 }
 0x2d3   : > { %v662_v8 = vsub.f32 1.0, %v661_v12 }
 0x2d4   : > { %v811_v33 = vor.u32 1.1754944e-38, %v810_v30  ;;  %vm809_vm5 = vcmp.eq.f32.partialorder %v808_v31, 8.507059e+37 }
 0x2d5   : > { %v663_v17 = vmul.f32 %v2789_v10, %v662_v8 }
 0x2d7   : > { %v664_v19 = vadd.f32 %v2789_v10, %v663_v17 }
 0x2d8   : > { %v2791_v2 = vpop.eup %2790 }
 0x2d9   : > { %v800_v21 = vmul.f32 %v2791_v2, %v784_v14  ;;  %v668_v22 = vsel %vm667_vm13, %v2789_v10, %v664_v19  ;;  %vm805_vm15 = vweird.f32 %v2791_v2 }
 0x2da   : > { %v673_v23 = vsel %vm670_vm14, %v672_v20, %v668_v22  ;;  %vm806_vm4 = vmor %vm804_vm3, %vm805_vm15 }
 0x2db   : > { %v801_v25 = vsub.f32 1.0, %v800_v21  ;;  %v675_v26 = vmul.f32 %v3360_v15, %v673_v23 }
 0x2dd   : > { %v802_v27 = vmul.f32 %v2791_v2, %v801_v25  ;;  %v677_v28 = vpack.c.bf16 %v675_v26, %v675_v26 }
 0x2df   : > { %v803_v29 = vadd.f32 %v2791_v2, %v802_v27 }
 0x2e1   : > { %2465 = vmatmul.msk.bf16.vlgmr.msrb.gmra.mxu3 %vm584_vm1, %v677_v28  ;;  %v807_v32 = vsel %vm806_vm4, %v2791_v2, %v803_v29 }
 0x2e2   : > { %v812_v34 = vsel %vm809_vm5, %v811_v33, %v807_v32 }
 0x2e3   : > { %v814_v36 = vmul.f32 %v3365_v18, %v812_v34 }
 0x2e5   : > { %v816_v37 = vpack.c.bf16 %v814_v36, %v814_v36 }
 0x2eb   : > { %v3407_v48 = vpop.xlane.xlu2 %1059 }
 0x2ec   : > { %v1084_v25 = vand.u32 2147483647, %v3407_v48 }
 0x2f1   : > { %2469 = vmatmul.msk.bf16.vlgmr.msra.gmra.mxu3 %vm584_vm1, %v816_v37 }
 0x30c   : > { %v919_v15 = vpop.xlane.xlu1 %918 }
 0x30d   : > { %2792 = vrcp.f32 %v919_v15  ;;  %v934_v51 = vand.u32 2147483648, %v919_v15  ;;  %vm928_vm7 = vweird.f32 %v919_v15  ;;  %v932_v52 = vand.u32 2147483647, %v919_v15 }
 0x30f   : > { %v935_v56 = vor.u32 1.1754944e-38, %v934_v51  ;;  %vm933_vm9 = vcmp.eq.f32.partialorder %v932_v52, 8.507059e+37 }
 0x313   : > { %v2793_v38 = vpop.eup %2792 }
 0x314   : > { %v922_v40 = vpop.xlane.xlu1 %921  ;;  %v924_v42 = vmul.f32 %v2793_v38, %v919_v15  ;;  %v1057_v44 = vpop.xlane.xlu0 %1056  ;;  %vm929_vm6 = vweird.f32 %v2793_v38 }
 0x315   : > { %2794 = vrcp.f32 %v922_v40  ;;  %vm930_vm8 = vmor %vm928_vm7, %vm929_vm6  ;;  %v948_v61 = vand.u32 2147483648, %v922_v40  ;;  %vm942_vm11 = vweird.f32 %v922_v40  ;;  %v946_v13 = vand.u32 2147483647, %v922_v40 }
 0x316   : > { %v925_v43 = vsub.f32 1.0, %v924_v42  ;;  %2796 = vrcp.f32 %v1057_v44  ;;  %vm1066_vm15 = vweird.f32 %v1057_v44  ;;  %v1070_v14 = vand.u32 2147483647, %v1057_v44 }
 0x317   : > { %2798 = vrcp.f32 %v3407_v48  ;;  %v949_v6 = vor.u32 1.1754944e-38, %v948_v61  ;;  %vm947_vm13 = vcmp.eq.f32.partialorder %v946_v13, 8.507059e+37  ;;  %vm1080_vm6 = vweird.f32 %v3407_v48 }
 0x318   : > { %v926_v46 = vmul.f32 %v2793_v38, %v925_v43  ;;  %vm1071_vm4 = vcmp.eq.f32.partialorder %v1070_v14, 8.507059e+37 }
 0x31a   : > { %v927_v49 = vadd.f32 %v2793_v38, %v926_v46 }
 0x31b   : > { %v2795_v45 = vpop.eup %2794 }
 0x31c   : > { %v938_v47 = vmul.f32 %v2795_v45, %v922_v40  ;;  %v2797_v50 = vpop.eup %2796  ;;  %v931_v53 = vsel %vm930_vm8, %v2793_v38, %v927_v49  ;;  %vm943_vm10 = vweird.f32 %v2795_v45  ;;  %vm1085_vm8 = vcmp.eq.f32.partialorder %v1084_v25, 8.507059e+37 }
 0x31d   : > { %v1062_v55 = vmul.f32 %v2797_v50, %v1057_v44  ;;  %v936_v57 = vsel %vm933_vm9, %v935_v56, %v931_v53  ;;  %v2799_v60 = vpop.eup %2798  ;;  %vm944_vm12 = vmor %vm942_vm11, %vm943_vm10  ;;  %vm1067_vm14 = vweird.f32 %v2797_v50  ;;  %v2607_v53 = vld [vmem:[%s3751_s3 + $0x8] sm:$0xff]  ;;  %vm1161_vm9 = vcmask 130048  }
 0x31e   : > { %v939_v18 = vsub.f32 1.0, %v938_v47  ;;  %v951_v62 = vmul.f32 %v3377_v35, %v936_v57  ;;  %v1076_v0 = vmul.f32 %v2799_v60, %v3407_v48  ;;  %v1072_v35 = vand.u32 2147483648, %v1057_v44  ;;  %vm1068_vm3 = vmor %vm1066_vm15, %vm1067_vm14  ;;  %1193 = vmatpush.bf16.msra.mxu0 %v2607_v53 }
 0x31f   : > { %v1063_v59 = vsub.f32 1.0, %v1062_v55  ;;  %vm1081_vm5 = vweird.f32 %v2799_v60  ;;  %vm1164_vm10 = vcmask 195584  }
 0x320   : > { %v940_v54 = vmul.f32 %v2795_v45, %v939_v18  ;;  %v953_v7 = vpack.c.bf16 %v951_v62, %v951_v62  ;;  %v1077_v10 = vsub.f32 1.0, %v1076_v0  ;;  %v1073_v2 = vor.u32 1.1754944e-38, %v1072_v35  ;;  %vm1082_vm7 = vmor %vm1080_vm6, %vm1081_vm5 }
 0x321   : > { %v1064_v4 = vmul.f32 %v2797_v50, %v1063_v59  ;;  %vm1331_vm5 = vcmask 523264  }
 0x322   : > { %v941_v58 = vadd.f32 %v2795_v45, %v940_v54  ;;  %v1078_v17 = vmul.f32 %v2799_v60, %v1077_v10  ;;  %v2606_v54 = vld [vmem:[%s3751_s3] sm:$0xff] }
 0x323   : > { %v1065_v11 = vadd.f32 %v2797_v50, %v1064_v4  ;;  %1194 = vmatpush.bf16.msra.mxu0 %v2606_v54  ;;  %v2753_v10 = vld [vmem:[%s3752_s4] ss:$0 sm:$0xff] }
 0x324   : > { %v945_v1 = vsel %vm944_vm12, %v2795_v45, %v941_v58  ;;  %v1079_v23 = vadd.f32 %v2799_v60, %v1078_v17 }
 0x325   : > { %v950_v9 = vsel %vm947_vm13, %v949_v6, %v945_v1  ;;  %v1069_v3 = vsel %vm1068_vm3, %v2797_v50, %v1065_v11 }
 0x326   : > { %v952_v12 = vmul.f32 %v3381_v39, %v950_v9  ;;  %v1074_v22 = vsel %vm1071_vm4, %v1073_v2, %v1069_v3  ;;  %v1086_v39 = vand.u32 2147483648, %v3407_v48  ;;  %v1083_v28 = vsel %vm1082_vm7, %v2799_v60, %v1079_v23  ;;  %v514_v9 = vld [vmem:[%s3257_s27] sm:$0xff]  }
 0x327   : > { %v1115_v8 = vpop.permute.xlu0 %1114  ;;  %v1089_v26 = vmul.f32 %v3384_v41, %v1074_v22  ;;  %v516_v11 = vunpack.c.l.bf16 %v514_v9 }
 0x328   : > { %v1120_v20 = vsel %vm683_vm2, %v1115_v8, 0  ;;  %v954_v21 = vpack.c.bf16 %v952_v12, %v952_v12  ;;  %v1087_v30 = vor.u32 1.1754944e-38, %v1086_v39 }
 0x329   : > { %v1091_v31 = vpack.c.bf16 %v1089_v26, %v1089_v26 }
 0x32a   : > { %v1088_v32 = vsel %vm1085_vm8, %v1087_v30, %v1083_v28 }
 0x32b   : > { %v1090_v33 = vmul.f32 %v3369_v24, %v1088_v32 }
 0x32c   : > { %v956_v63 = vpop.permute.xlu1 %955 }
 0x32d   : > { %v961_v5 = vsel %vm683_vm2, %v956_v63, 0  ;;  %v1092_v34 = vpack.c.bf16 %v1090_v33, %v1090_v33 }
 0x32e   : > { %970 = vmatpush.bf16.msra.mxu2 %v961_v5 }
 0x331   : > { %2472 = vmatmul.msk.bf16.vlgmr.msra.gmra.mxu2 %vm584_vm1, %v953_v7 }
 0x334   : > { %v977_v16 = vpop.permute.xlu1 %976 }
 0x335   : > { %v982_v19 = vsel %vm683_vm2, %v977_v16, 0  ;;  %v517_v16 = vunpack.c.h.bf16 %v514_v9 }
 0x336   : > { %991 = vmatpush.bf16.msrb.mxu3 %v982_v19 }
 0x339   : > { %2473 = vmatmul.msk.bf16.vlgmr.msrb.gmra.mxu3 %vm584_vm1, %v954_v21 }
 0x33a   : > { %1129 = vmatpush.bf16.msra.mxu3 %v1120_v20  ;;  %v3069_v20 = vmov 32.0  }
 0x33b   : > { %2800 = vrcp.f32 %v3069_v20 }
 0x33c   : > { %v1094_v27 = vpop.permute.xlu1 %1093 }
 0x33d   : > { %v1099_v29 = vsel %vm683_vm2, %v1094_v27, 0 }
 0x33e   : > { %1108 = vmatpush.bf16.msrb.mxu2 %v1099_v29 }
 0x341   : > { %2476 = vmatmul.msk.bf16.vlgmr.msrb.gmra.mxu2 %vm584_vm1, %v1091_v31  ;;  %v2801_v21 = vpop.eup %2800 }
 0x342   : > { %v1210_v22 = vmul.f32 32.0, %v2801_v21  ;;  %vm1214_vm11 = vweird.f32 %v2801_v21 }
 0x344   : > { %v1211_v23 = vsub.f32 1.0, %v1210_v22 }
 0x346   : > { %v1212_v39 = vmul.f32 %v2801_v21, %v1211_v23 }
 0x348   : > { %v1213_v25 = vadd.f32 %v2801_v21, %v1212_v39 }
 0x349   : > { %2477 = vmatmul.msk.bf16.vlgmr.msra.gmra.mxu3 %vm584_vm1, %v1092_v34 }
 0x34a   : > { %v3448_v26 = vsel %vm1214_vm11, %v2801_v21, %v1213_v25 }
 0x353   : > { %v834_v37 = vpop.f32.mrf.mxu2 }
 0x354   : > { %v696_v36 = vpop.f32.mrf.mxu3 }
 0x35b   : > { %v836_v15 = vpop.f32.mrf.mxu2 }
 0x35c   : > { %v698_v41 = vpop.f32.mrf.mxu3  ;;  %v2609_v15 = vld [vmem:[%s3755_s7 + $0x8] sm:$0xff] }
 0x35d   : > { %1292 = vmatpush.bf16.msra.mxu1 %v2609_v15 }
 0x364   : > { %v717_v38 = vpop.f32.mrf.mxu3 }
 0x36c   : > { %v719_v40 = vpop.f32.mrf.mxu3 }
 0x374   : > { %v855_v42 = vpop.f32.mrf.mxu3 }
 0x375   : > { %v2722_v43 = vpack.i.bf16 %v855_v42, %v834_v37  ;;  %v2608_v42 = vld [vmem:[%s3755_s7] sm:$0xff] }
 0x376   : > { %1293 = vmatpush.bf16.msra.mxu1 %v2608_v42 }
 0x377   : > { %2723 = vrot.lane.b32.xlu2 %v2722_v43, %s3771_s17  ;;  %s3804_s17 = smov 16  }
 0x37c   : > { %v857_v44 = vpop.f32.mrf.mxu3 }
 0x3b4   : > { %v972_v45 = vpop.f32.mrf.mxu2 }
 0x3bc   : > { %v974_v46 = vpop.f32.mrf.mxu2  ;;  %v993_v47 = vpop.f32.mrf.mxu3 }
 0x3bd   : > { %v2727_v48 = vpack.i.bf16 %v993_v47, %v972_v45 }
 0x3bf   : > { %2728 = vrot.lane.b32.xlu1 %v2727_v48, %s3775_s14  ;;  %s2599_s14 = sshll.u32 %s3163_s29, 1 }
 0x3c4   : > { %v995_v24 = vpop.f32.mrf.mxu3  ;;  %v1110_v49 = vpop.f32.mrf.mxu2 }
 0x3cc   : > { %v1112_v18 = vpop.f32.mrf.mxu2  ;;  %v1131_v50 = vpop.f32.mrf.mxu3 }
 0x3cd   : > { %v2732_v51 = vpack.i.bf16 %v1131_v50, %v1110_v49 }
 0x3cf   : > { %2733 = vrot.lane.b32.xlu1 %v2732_v51, %s3774_s11  ;;  %s3803_s11 = smov 8  }
 0x3d1   : > { %v2724_v56 = vpop.permute.xlu2 %2723 }
 0x3d2   : > { %v2726_v57 = vunpack.i.h.bf16 %v2724_v56  ;;  %v2725_v58 = vunpack.i.l.bf16 %v2724_v56  ;;  %v2754_v56 = vld [vmem:[#allocation7] ss:$0 sm:$0xff] }
 0x3d4   : > { %v1133_v52 = vpop.f32.mrf.mxu3  ;;  %v1160_v62 = vsel %vm584_vm1, %v717_v38, %v2726_v57  ;;  %v1159_v13 = vsel %vm584_vm1, %v696_v36, %v2725_v58 }
 0x431   : > { %v2729_v55 = vpop.permute.xlu1 %2728 }
 0x432   : > { %v2731_v59 = vunpack.i.h.bf16 %v2729_v55  ;;  %v2730_v60 = vunpack.i.l.bf16 %v2729_v55 }
 0x434   : > { %v1163_v1 = vsel %vm1161_vm9, %v1160_v62, %v2731_v59  ;;  %v1162_v4 = vsel %vm1161_vm9, %v1159_v13, %v2730_v60  ;;  %v2755_v60 = vld [vmem:[%s3754_s6] ss:$0 sm:$0xff] }
 0x441   : > { %v2734_v61 = vpop.permute.xlu1 %2733 }
 0x442   : > { %v2736_v63 = vunpack.i.h.bf16 %v2734_v61  ;;  %v2735_v0 = vunpack.i.l.bf16 %v2734_v61 }
 0x444   : > { %v1166_v5 = vsel %vm1164_vm10, %v1163_v1, %v2736_v63  ;;  %v1165_v6 = vsel %vm1164_vm10, %v1162_v4, %v2735_v0  ;;  %v2613_v4 = vld [vmem:[%s3757_s9 + $0x18] sm:$0xff] }
 0x445   : > { %v1167_v7 = vpack.c.bf16 %v1166_v5, %v1165_v6  ;;  %1339 = vmatpush.bf16.msra.mxu2 %v2613_v4  ;;  %v2612_v5 = vld [vmem:[%s3757_s9 + $0x10] sm:$0xff]  ;;  %v2611_v6 = vld [vmem:[%s3757_s9 + $0x8] sm:$0xff] }
 0x447   : > { %2486 = vmatmul.msk.bf16.vlgmr.msra.gmra.mxu0 %vm559_vm0, %v1167_v7  ;;  %v2610_v7 = vld [vmem:[%s3757_s9] sm:$0xff] }
 0x449   : > { %1340 = vmatpush.bf16.msra.mxu2 %v2612_v5 }
 0x44d   : > { %1341 = vmatpush.bf16.msra.mxu2 %v2611_v6 }
 0x451   : > { %1342 = vmatpush.bf16.msra.mxu2 %v2610_v7 }
 0x4c4   : > { %v1196_v35 = vpop.f32.mrf.mxu0 }
 0x4c5   : > { %v1197_v12 = vadd.f32 %v2753_v10, %v1196_v35 }
 0x4c7   : > { %v1201_v14 = vadd.f32 %v1197_v12, %v516_v11 }
 0x4c9   : > { %v1203_v8 = vsel %vm559_vm0, %v1201_v14, 0.0 }
 0x4ca   : > { %1204 = vadd.xlane.f32.xlu1 %v1203_v8 }
 0x4cc   : > { %v1198_v17 = vpop.f32.mrf.mxu0 }
 0x4cd   : > { %v1199_v3 = vadd.f32 %v2753_v10, %v1198_v17  ;;  %v2756_v10 = vld [vmem:[%s3756_s8] ss:$0 sm:$0xff] }
 0x4ce   : > { %v2757_v17 = vld [vmem:[%s3758_s10] ss:$0 sm:$0xff] }
 0x4cf   : > { %v1202_v19 = vadd.f32 %v1199_v3, %v517_v16 }
 0x4d1   : > { %v1206_v2 = vsel %vm559_vm0, %v1202_v19, 0.0 }
 0x4d2   : > { %1207 = vadd.xlane.f32.xlu0 %v1206_v2 }
 0x53d   : > { %v1205_v27 = vpop.xlane.xlu1 %1204 }
 0x53e   : > { %v1216_v28 = vmul.f32 %v3448_v26, %v1205_v27 }
 0x540   : > { %v1218_v29 = vsub.f32 %v1201_v14, %v1216_v28 }
 0x542   : > { %v1220_v30 = vmul.f32 %v1218_v29, %v1218_v29 }
 0x544   : > { %v1222_v31 = vsel %vm559_vm0, %v1220_v30, 0.0 }
 0x545   : > { %v1208_v32 = vpop.xlane.xlu0 %1207  ;;  %1223 = vadd.xlane.f32.xlu2 %v1222_v31 }
 0x546   : > { %v1217_v33 = vmul.f32 %v3448_v26, %v1208_v32 }
 0x548   : > { %v1219_v34 = vsub.f32 %v1202_v19, %v1217_v33 }
 0x54a   : > { %v1221_v36 = vmul.f32 %v1219_v34, %v1219_v34 }
 0x54c   : > { %v1225_v37 = vsel %vm559_vm0, %v1221_v36, 0.0 }
 0x54d   : > { %1226 = vadd.xlane.f32.xlu1 %v1225_v37 }
 0x5b8   : > { %v1224_v41 = vpop.xlane.xlu2 %1223 }
 0x5b9   : > { %v1228_v38 = vmul.f32 %v1224_v41, %v3448_v26  ;;  %v2615_v41 = vld [vmem:[%s3749_s1 + $0x18] sm:$0xff] }
 0x5ba   : > { %1458 = vmatpush.bf16.msrb.mxu3 %v2615_v41 }
 0x5bb   : > { %v1230_v40 = vadd.f32 1e-05, %v1228_v38 }
 0x5bd   : > { %2802 = vrsqrt.f32 %v1230_v40  ;;  %vm1238_vm13 = vweird.f32 %v1230_v40 }
 0x5c0   : > { %v1227_v43 = vpop.xlane.xlu1 %1226 }
 0x5c1   : > { %v1229_v44 = vmul.f32 %v1227_v43, %v3448_v26 }
 0x5c3   : > { %v2803_v45 = vpop.eup %2802  ;;  %v1231_v46 = vadd.f32 1e-05, %v1229_v44 }
 0x5c4   : > { %v1233_v47 = vmul.f32 %v2803_v45, %v1230_v40  ;;  %vm1239_vm12 = vweird.f32 %v2803_v45  ;;  %v2614_v40 = vld [vmem:[%s3749_s1 + $0x10] sm:$0xff] }
 0x5c5   : > { %2804 = vrsqrt.f32 %v1231_v46  ;;  %vm1240_vm14 = vmor %vm1238_vm13, %vm1239_vm12  ;;  %vm1248_vm3 = vweird.f32 %v1231_v46  ;;  %1459 = vmatpush.bf16.msrb.mxu3 %v2614_v40 }
 0x5c6   : > { %v1234_v48 = vmul.f32 %v2803_v45, %v1233_v47 }
 0x5c8   : > { %v1235_v24 = vmul.f32 0.5, %v1234_v48 }
 0x5ca   : > { %v1236_v49 = vsub.f32 1.5, %v1235_v24 }
 0x5cb   : > { %v2805_v18 = vpop.eup %2804 }
 0x5cc   : > { %v1237_v50 = vmul.f32 %v2803_v45, %v1236_v49  ;;  %v1243_v51 = vmul.f32 %v2805_v18, %v1231_v46  ;;  %vm1249_vm15 = vweird.f32 %v2805_v18 }
 0x5cd   : > { %vm1250_vm4 = vmor %vm1248_vm3, %vm1249_vm15 }
 0x5ce   : > { %v1244_v52 = vmul.f32 %v2805_v18, %v1243_v51  ;;  %v1241_v53 = vsel %vm1240_vm14, %v2803_v45, %v1237_v50 }
 0x5cf   : > { %v1252_v57 = vmul.f32 %v1241_v53, %v1218_v29 }
 0x5d0   : > { %v1245_v54 = vmul.f32 0.5, %v1244_v52 }
 0x5d1   : > { %v1258_v61 = vmul.f32 %v2754_v56, %v1252_v57 }
 0x5d2   : > { %v1246_v55 = vsub.f32 1.5, %v1245_v54 }
 0x5d3   : > { %v1264_v63 = vadd.f32 %v2755_v60, %v1258_v61 }
 0x5d4   : > { %v1247_v58 = vmul.f32 %v2805_v18, %v1246_v55  ;;  %v2758_v55 = vld [vmem:[#allocation8] ss:$0 sm:$0xff] }
 0x5d6   : > { %v1251_v59 = vsel %vm1250_vm4, %v2805_v18, %v1247_v58 }
 0x5d7   : > { %v1253_v62 = vmul.f32 %v1251_v59, %v1219_v34  ;;  %v2759_v59 = vld [vmem:[%s3760_s12] ss:$0 sm:$0xff] }
 0x5d9   : > { %v1259_v13 = vmul.f32 %v2754_v56, %v1253_v62 }
 0x5db   : > { %v1265_v0 = vadd.f32 %v2755_v60, %v1259_v13 }
 0x5dd   : > { %v1266_v1 = vpack.c.bf16 %v1265_v0, %v1264_v63 }
 0x5df   : > { %2495 = vmatmul.msk.bf16.vlgmr.msra.gmra.mxu1 %vm559_vm0, %v1266_v1  ;;  %v2760_v1 = vld [vmem:[#allocation5 + $0x1] ss:$0 sm:$0xff] }
 0x65c   : > { %v1295_v9 = vpop.f32.mrf.mxu1 }
 0x65d   : > { %v1296_v11 = vadd.f32 %v2756_v10, %v1295_v9 }
 0x65f   : > { %v1300_v14 = vmax.f32 %v1296_v11, 0.0 }
 0x664   : > { %v1297_v35 = vpop.f32.mrf.mxu1 }
 0x665   : > { %v1298_v12 = vadd.f32 %v2756_v10, %v1297_v35 }
 0x667   : > { %v1301_v8 = vmax.f32 %v1298_v12, 0.0 }
 0x669   : > { %v1302_v16 = vpack.c.bf16 %v1301_v8, %v1300_v14 }
 0x66b   : > { %2512 = vmatmul.msk.bf16.vlgmr.msra.gmra.mxu2 %vm1331_vm5, %v1302_v16 }
 0x6ee   : > { %v1344_v3 = vpop.f32.mrf.mxu2 }
 0x6ef   : > { %v1345_v19 = vadd.f32 %v2757_v17, %v1344_v3 }
 0x6f1   : > { %v1349_v2 = vadd.f32 %v1345_v19, %v1264_v63 }
 0x6f3   : > { %v1351_v20 = vsel %vm559_vm0, %v1349_v2, 0.0 }
 0x6f4   : > { %1352 = vadd.xlane.f32.xlu0 %v1351_v20 }
 0x6f6   : > { %v1346_v21 = vpop.f32.mrf.mxu2 }
 0x6f7   : > { %v1347_v22 = vadd.f32 %v2757_v17, %v1346_v21 }
 0x6f9   : > { %v1350_v23 = vadd.f32 %v1347_v22, %v1265_v0 }
 0x6fb   : > { %v1354_v39 = vsel %vm559_vm0, %v1350_v23, 0.0 }
 0x6fc   : > { %1355 = vadd.xlane.f32.xlu2 %v1354_v39 }
 0x767   : > { %v1353_v25 = vpop.xlane.xlu0 %1352 }
 0x768   : > { %v1357_v27 = vmul.f32 %v1353_v25, %v3448_v26 }
 0x76a   : > { %v1359_v28 = vsub.f32 %v1349_v2, %v1357_v27 }
 0x76c   : > { %v1361_v29 = vmul.f32 %v1359_v28, %v1359_v28 }
 0x76e   : > { %v1363_v30 = vsel %vm559_vm0, %v1361_v29, 0.0 }
 0x76f   : > { %v1356_v31 = vpop.xlane.xlu2 %1355  ;;  %1364 = vadd.xlane.f32.xlu1 %v1363_v30 }
 0x770   : > { %v1358_v32 = vmul.f32 %v1356_v31, %v3448_v26 }
 0x772   : > { %v1360_v33 = vsub.f32 %v1350_v23, %v1358_v32 }
 0x774   : > { %v1362_v34 = vmul.f32 %v1360_v33, %v1360_v33 }
 0x776   : > { %v1366_v36 = vsel %vm559_vm0, %v1362_v34, 0.0 }
 0x777   : > { %1367 = vadd.xlane.f32.xlu0 %v1366_v36 }
 0x7e2   : > { %v1365_v37 = vpop.xlane.xlu1 %1364 }
 0x7e3   : > { %v1369_v15 = vmul.f32 %v1365_v37, %v3448_v26 }
 0x7e5   : > { %v1371_v38 = vadd.f32 1e-05, %v1369_v15 }
 0x7e7   : > { %2806 = vrsqrt.f32 %v1371_v38  ;;  %vm1379_vm7 = vweird.f32 %v1371_v38 }
 0x7ea   : > { %v1368_v42 = vpop.xlane.xlu0 %1367 }
 0x7eb   : > { %v1370_v43 = vmul.f32 %v1368_v42, %v3448_v26 }
 0x7ed   : > { %v2807_v44 = vpop.eup %2806  ;;  %v1372_v45 = vadd.f32 1e-05, %v1370_v43 }
 0x7ee   : > { %v1374_v46 = vmul.f32 %v2807_v44, %v1371_v38  ;;  %vm1380_vm6 = vweird.f32 %v2807_v44 }
 0x7ef   : > { %2808 = vrsqrt.f32 %v1372_v45  ;;  %vm1381_vm8 = vmor %vm1379_vm7, %vm1380_vm6  ;;  %vm1389_vm12 = vweird.f32 %v1372_v45 }
 0x7f0   : > { %v1375_v47 = vmul.f32 %v2807_v44, %v1374_v46 }
 0x7f2   : > { %v1376_v48 = vmul.f32 0.5, %v1375_v47 }
 0x7f4   : > { %v1377_v24 = vsub.f32 1.5, %v1376_v48 }
 0x7f5   : > { %v2809_v49 = vpop.eup %2808 }
 0x7f6   : > { %v1378_v18 = vmul.f32 %v2807_v44, %v1377_v24  ;;  %v1384_v50 = vmul.f32 %v2809_v49, %v1372_v45  ;;  %vm1390_vm11 = vweird.f32 %v2809_v49 }
 0x7f7   : > { %vm1391_vm13 = vmor %vm1389_vm12, %vm1390_vm11 }
 0x7f8   : > { %v1385_v51 = vmul.f32 %v2809_v49, %v1384_v50  ;;  %v1382_v52 = vsel %vm1381_vm8, %v2807_v44, %v1378_v18 }
 0x7f9   : > { %v1393_v56 = vmul.f32 %v1382_v52, %v1359_v28 }
 0x7fa   : > { %v1386_v53 = vmul.f32 0.5, %v1385_v51 }
 0x7fb   : > { %v1399_v60 = vmul.f32 %v2758_v55, %v1393_v56 }
 0x7fc   : > { %v1387_v54 = vsub.f32 1.5, %v1386_v53 }
 0x7fd   : > { %v3502_v13 = vadd.f32 %v2759_v59, %v1399_v60 }
 0x7fe   : > { %v1388_v57 = vmul.f32 %v2809_v49, %v1387_v54 }
 0x800   : > { %v1392_v58 = vsel %vm1391_vm13, %v2809_v49, %v1388_v57 }
 0x801   : > { %v1394_v61 = vmul.f32 %v1392_v58, %v1360_v33 }
 0x803   : > { %v1400_v62 = vmul.f32 %v2758_v55, %v1394_v61 }
 0x805   : > { %v3504_v63 = vadd.f32 %v2759_v59, %v1400_v62 }
 0x807   : > { %v1431_v0 = vpack.c.bf16 %v3504_v63, %v3502_v13 }
 0x809   : > { %2541 = vmatmul.msk.bf16.vlgmr.msrb.gmra.mxu3 %vm559_vm0, %v1431_v0 }
 0x88c   : > { %v1461_v4 = vpop.f32.mrf.mxu3 }
 0x88d   : > { %v1462_v5 = vadd.f32 %v2760_v1, %v1461_v4 }
 0x88f   : > { %v1466_v6 = vpack.c.bf16 %v1462_v5, %v1462_v5 }
 0x891   : > { %v1469_v7 = vunpack.c.l.b16 %v1466_v6 }
 0x893   : > { %v3509_v9 = vpack.c.b16 %v1469_v7, %v1469_v7 }
 0x894   : > { %v1463_v10 = vpop.f32.mrf.mxu3 }
 0x895   : > { %v1464_v11 = vadd.f32 %v2760_v1, %v1463_v10  ;;  %1610 = vrot.lane.b32.xlu0 %v3509_v9, %s3056_s20  ;;  %1471 = vrot.lane.b32.xlu2 %v3509_v9, %s3057_s24 }
 0x897   : > { %v1467_v35 = vpack.c.bf16 %v1464_v11, %v1464_v11 }
 0x899   : > { %v1493_v12 = vunpack.c.l.b16 %v1467_v35 }
 0x89b   : > { %v3515_v14 = vpack.c.b16 %v1493_v12, %v1493_v12 }
 0x89d   : > { %1495 = vrot.lane.b32.xlu1 %v3515_v14, %s3057_s24  ;;  %1633 = vrot.lane.b32.xlu0 %v3515_v14, %s3056_s20  ;;  %s3797_s24 = smov 72   ;;  %s3798_s20 = smov 104  }
 0x89e   : > { %1608 = vrot.lane.b32.xlu2 %v3509_v9, %s3055_s21 }
 0x8a5   : > { %1631 = vrot.lane.b32.xlu1 %v3515_v14, %s3055_s21  ;;  %1748 = vrot.lane.b32.xlu0 %v3509_v9, %s3059_s16  ;;  %s3799_s21 = smov 64  }
 0x8a6   : > { %1771 = vrot.lane.b32.xlu2 %v3515_v14, %s3059_s16  ;;  %s3801_s16 = smov 48  }
 0x8ad   : > { %1746 = vrot.lane.b32.xlu1 %v3509_v9, %s3058_s5  ;;  %1769 = vrot.lane.b32.xlu0 %v3515_v14, %s3058_s5  ;;  %s3800_s5 = smov 56  }
 0x8ae   : > { %1886 = vrot.lane.b32.xlu2 %v3509_v9, %s3797_s24 }
 0x8b5   : > { %1909 = vrot.lane.b32.xlu1 %v3515_v14, %s3797_s24  ;;  %1884 = vrot.lane.b32.xlu0 %v3509_v9, %s3798_s20  ;;  %s2328_s24 = scalar_lea.hbm %s3761_s13, %s2599_s14 }
 0x8b6   : > { %1907 = vrot.lane.b32.xlu2 %v3515_v14, %s3798_s20  ;;  %s2329_s20 = sshll.u32 %s510_s22, 4  ;;  %s2330_s20 = int_to_ptr.vmem [resolvable:$true] %s2329_s20 }
 0x8ef   : > { %v1472_v8 = vpop.permute.xlu2 %1471 }
 0x8f0   : > { %v1477_v16 = vsel %vm584_vm1, %v1472_v8, 0 }
 0x8f1   : > { %1486 = vmatpush.bf16.xpose.msrb.mxu0 %v1477_v16 }
 0x8f8   : > { %2542 = vmatmul.msk.bf16.vlgmr.msrb.gmra.mxu0 %vm584_vm1, %v1466_v6  ;;  %v1609_v17 = vpop.permute.xlu2 %1608 }
 0x900   : > { %v1772_v2 = vpop.permute.xlu2 %1771 }
 0x901   : > { %v1777_v28 = vsel %vm584_vm1, %v1772_v2, 0 }
 0x907   : > { %v1611_v3 = vpop.permute.xlu0 %1610 }
 0x908   : > { %v1616_v19 = vsel %vm584_vm1, %v1611_v3, 0  ;;  %v1887_v39 = vpop.permute.xlu2 %1886 }
 0x909   : > { %1625 = vmatpush.bf16.xpose.msra.mxu0 %v1616_v19  ;;  %v1892_v30 = vsel %vm584_vm1, %v1887_v39, 0 }
 0x90f   : > { %v1496_v20 = vpop.permute.xlu1 %1495  ;;  %v1634_v21 = vpop.permute.xlu0 %1633 }
 0x910   : > { %v1501_v22 = vsel %vm584_vm1, %v1496_v20, 0  ;;  %v1639_v23 = vsel %vm584_vm1, %v1634_v21, 0  ;;  %2546 = vmatmul.msk.bf16.vlgmr.msra.gmra.mxu0 %vm584_vm1, %v1609_v17  ;;  %v1908_v37 = vpop.permute.xlu2 %1907 }
 0x911   : > { %1510 = vmatpush.bf16.xpose.msrb.mxu1 %v1501_v22 }
 0x917   : > { %v1632_v25 = vpop.permute.xlu1 %1631  ;;  %v1749_v27 = vpop.permute.xlu0 %1748 }
 0x918   : > { %v1754_v29 = vsel %vm584_vm1, %v1749_v27, 0  ;;  %2543 = vmatmul.msk.bf16.vlgmr.msrb.gmra.mxu1 %vm584_vm1, %v1467_v35 }
 0x919   : > { %1648 = vmatpush.bf16.xpose.msra.mxu1 %v1639_v23  ;;  %1763 = vmatpush.bf16.xpose.msrb.mxu0 %v1754_v29 }
 0x91f   : > { %v1747_v31 = vpop.permute.xlu1 %1746  ;;  %v1770_v32 = vpop.permute.xlu0 %1769 }
 0x920   : > { %2550 = vmatmul.msk.bf16.vlgmr.msrb.gmra.mxu0 %vm584_vm1, %v1747_v31 }
 0x921   : > { %1786 = vmatpush.bf16.xpose.msrb.mxu1 %v1777_v28  ;;  %1901 = vmatpush.bf16.xpose.msra.mxu0 %v1892_v30 }
 0x927   : > { %v1910_v33 = vpop.permute.xlu1 %1909  ;;  %v1885_v36 = vpop.permute.xlu0 %1884 }
 0x928   : > { %v1915_v34 = vsel %vm584_vm1, %v1910_v33, 0  ;;  %2547 = vmatmul.msk.bf16.vlgmr.msra.gmra.mxu1 %vm584_vm1, %v1632_v25 }
 0x929   : > { %1924 = vmatpush.bf16.xpose.msra.mxu1 %v1915_v34 }
 0x930   : > { %2554 = vmatmul.msk.bf16.vlgmr.msra.gmra.mxu0 %vm584_vm1, %v1885_v36 }
 0x938   : > { %2551 = vmatmul.msk.bf16.vlgmr.msrb.gmra.mxu1 %vm584_vm1, %v1770_v32 }
 0x948   : > { %2555 = vmatmul.msk.bf16.vlgmr.msra.gmra.mxu1 %vm584_vm1, %v1908_v37 }
 0x975   : > { %v1488_v41 = vpop.f32.mrf.mxu0 }
 0x976   : > { %v1516_v15 = vsel %vm584_vm1, %v1488_v41, -inf }
 0x977   : > { %1517 = vmax.xlane.f32.xlu1 %v1516_v15 }
 0x97d   : > { %v1490_v38 = vpop.f32.mrf.mxu0 }
 0x98d   : > { %v1627_v40 = vpop.f32.mrf.mxu0 }
 0x98e   : > { %v1654_v42 = vsel %vm584_vm1, %v1627_v40, -inf }
 0x98f   : > { %1655 = vmax.xlane.f32.xlu2 %v1654_v42 }
 0x995   : > { %v1512_v43 = vpop.f32.mrf.mxu1  ;;  %v1629_v44 = vpop.f32.mrf.mxu0 }
 0x996   : > { %v1519_v45 = vsel %vm584_vm1, %v1512_v43, -inf }
 0x997   : > { %1520 = vmax.xlane.f32.xlu0 %v1519_v45 }
 0x99d   : > { %v1514_v46 = vpop.f32.mrf.mxu1  ;;  %v1765_v47 = vpop.f32.mrf.mxu0 }
 0x99e   : > { %v1792_v48 = vsel %vm584_vm1, %v1765_v47, -inf }
 0x99f   : > { %1793 = vmax.xlane.f32.xlu0 %v1792_v48 }
 0x9a5   : > { %v1650_v24 = vpop.f32.mrf.mxu1  ;;  %v1767_v49 = vpop.f32.mrf.mxu0 }
 0x9a6   : > { %v1657_v18 = vsel %vm584_vm1, %v1650_v24, -inf }
 0x9a7   : > { %1658 = vmax.xlane.f32.xlu1 %v1657_v18 }
 0x9ad   : > { %v1652_v50 = vpop.f32.mrf.mxu1  ;;  %v3562_v51 = vpop.f32.mrf.mxu0 }
 0x9ae   : > { %v1930_v52 = vsel %vm584_vm1, %v3562_v51, -inf }
 0x9af   : > { %1931 = vmax.xlane.f32.xlu1 %v1930_v52 }
 0x9b5   : > { %v1788_v53 = vpop.f32.mrf.mxu1  ;;  %v1905_v54 = vpop.f32.mrf.mxu0 }
 0x9b6   : > { %v1795_v55 = vsel %vm584_vm1, %v1788_v53, -inf }
 0x9b7   : > { %1796 = vmax.xlane.f32.xlu2 %v1795_v55 }
 0x9bd   : > { %v1790_v56 = vpop.f32.mrf.mxu1 }
 0x9c5   : > { %v1926_v57 = vpop.f32.mrf.mxu1 }
 0x9c6   : > { %v1933_v58 = vsel %vm584_vm1, %v1926_v57, -inf }
 0x9c7   : > { %1934 = vmax.xlane.f32.xlu0 %v1933_v58 }
 0x9cd   : > { %v1928_v59 = vpop.f32.mrf.mxu1 }
 0x9db   : > { %1587 = vrot.lane.b32.xlu0 %v3515_v14, %s3799_s21 }
 0x9ea   : > { %v1518_v60 = vpop.xlane.xlu1 %1517 }
 0x9eb   : > { %v1522_v61 = vsub.f32 %v1488_v41, %v1518_v60 }
 0x9ed   : > { %v1524_v62 = vmul.f32 1.442695, %v1522_v61 }
 0x9ef   : > { %2810 = vpow2.f32 %v1524_v62 }
 0x9f5   : > { %v3570_v0 = vpop.eup %2810 }
 0x9f6   : > { %v1528_v1 = vsel %vm584_vm1, %v3570_v0, 0.0 }
 0x9f7   : > { %1529 = vadd.xlane.f32.xlu2 %v1528_v1 }
 0xa02   : > { %v1656_v4 = vpop.xlane.xlu2 %1655 }
 0xa03   : > { %v1660_v5 = vsub.f32 %v1627_v40, %v1656_v4 }
 0xa05   : > { %v1662_v6 = vmul.f32 1.442695, %v1660_v5 }
 0xa07   : > { %2812 = vpow2.f32 %v1662_v6 }
 0xa0a   : > { %v1521_v7 = vpop.xlane.xlu0 %1520 }
 0xa0b   : > { %v1523_v10 = vsub.f32 %v1512_v43, %v1521_v7 }
 0xa0d   : > { %v3574_v11 = vpop.eup %2812  ;;  %v1526_v35 = vmul.f32 1.442695, %v1523_v10 }
 0xa0e   : > { %v1666_v12 = vsel %vm584_vm1, %v3574_v11, 0.0 }
 0xa0f   : > { %2814 = vpow2.f32 %v1526_v35  ;;  %1704 = vrot.lane.b32.xlu2 %v3509_v9, %s3800_s5  ;;  %1667 = vadd.xlane.f32.xlu0 %v1666_v12 }
 0xa12   : > { %v1794_v2 = vpop.xlane.xlu0 %1793 }
 0xa13   : > { %v1798_v20 = vsub.f32 %v1765_v47, %v1794_v2 }
 0xa15   : > { %v3580_v8 = vpop.eup %2814  ;;  %v1800_v21 = vmul.f32 1.442695, %v1798_v20 }
 0xa16   : > { %v1531_v16 = vsel %vm584_vm1, %v3580_v8, 0.0 }
 0xa17   : > { %1532 = vadd.xlane.f32.xlu1 %v1531_v16 }
 0xa1a   : > { %v1659_v17 = vpop.xlane.xlu1 %1658 }
 0xa1b   : > { %v1661_v3 = vsub.f32 %v1650_v24, %v1659_v17 }
 0xa1d   : > { %v1664_v19 = vmul.f32 1.442695, %v1661_v3 }
 0xa1f   : > { %2816 = vpow2.f32 %v1664_v19 }
 0xa20   : > { %2818 = vpow2.f32 %v1800_v21 }
 0xa22   : > { %v1932_v34 = vpop.xlane.xlu1 %1931 }
 0xa23   : > { %1725 = vrot.lane.b32.xlu0 %v3515_v14, %s3800_s5  ;;  %v1936_v37 = vsub.f32 %v3562_v51, %v1932_v34  ;;  %s2318_s5 = scalar_lea.sflag [#allocation4], %s3253_s30 }
 0xa25   : > { %v3588_v23 = vpop.eup %2816  ;;  %v1938_v15 = vmul.f32 1.442695, %v1936_v37 }
 0xa26   : > { %v1669_v25 = vsel %vm584_vm1, %v3588_v23, 0.0  ;;  %v3592_v30 = vpop.eup %2818 }
 0xa27   : > { %v1804_v32 = vsel %vm584_vm1, %v3592_v30, 0.0 }
 0xa2a   : > { %v1797_v22 = vpop.xlane.xlu2 %1796 }
 0xa2b   : > { %v1799_v39 = vsub.f32 %v1788_v53, %v1797_v22 }
 0xa2d   : > { %v1802_v27 = vmul.f32 1.442695, %v1799_v39 }
 0xa2f   : > { %2820 = vpow2.f32 %v1802_v27 }
 0xa30   : > { %1566 = vrot.lane.b32.xlu1 %v3509_v9, %s3799_s21  ;;  %s2331_s21 = sshll.u32 %s2328_s24, 4  ;;  %s2332_s21 = int_to_ptr.hbm [resolvable:$true] %s2331_s21 }
 0xa31   : > { %s2986_s29 = sshra.s32 %s2332_s21, 4  ;;  %s2987_s29 = int_to_ptr.hbm [resolvable:$true] %s2986_s29 }
 0xa32   : > { %p2993_p11 = scmp.lt.s32.totalorder %s2987_s29, %s3761_s13 }
 0xa35   : > { %v3596_v33 = vpop.eup %2820 }
 0xa36   : > { %v1807_v36 = vsel %vm584_vm1, %v3596_v33, 0.0 }
 0xa38   : > { %1670 = vadd.xlane.f32.xlu2 %v1669_v25 }
 0xa3a   : > { %v1935_v28 = vpop.xlane.xlu0 %1934 }
 0xa3b   : > { %v1937_v29 = vsub.f32 %v1926_v57, %v1935_v28 }
 0xa3d   : > { %v1940_v31 = vmul.f32 1.442695, %v1937_v29 }
 0xa3f   : > { %2822 = vpow2.f32 %v1940_v31 }
 0xa40   : > { %1805 = vadd.xlane.f32.xlu2 %v1804_v32  ;;  %2824 = vpow2.f32 %v1938_v15 }
 0xa45   : > { %v3601_v41 = vpop.eup %2822 }
 0xa46   : > { %v1945_v38 = vsel %vm584_vm1, %v3601_v41, 0.0  ;;  %v3606_v43 = vpop.eup %2824 }
 0xa47   : > { %v1942_v44 = vsel %vm584_vm1, %v3606_v43, 0.0 }
 0xa48   : > { %1808 = vadd.xlane.f32.xlu2 %v1807_v36 }
 0xa4d   : > { %v1588_v40 = vpop.permute.xlu0 %1587  ;;  %1946 = vadd.xlane.f32.xlu0 %v1945_v38 }
 0xa4e   : > { %v1593_v42 = vsel %vm683_vm2, %v1588_v40, 0 }
 0xa4f   : > { %1602 = vmatpush.bf16.msra.mxu3 %v1593_v42 }
 0xa5a   : > { %1943 = vadd.xlane.f32.xlu1 %v1942_v44 }
 0xa60   : > { %1842 = vrot.lane.b32.xlu2 %v3509_v9, %s3801_s16 }
 0xa68   : > { %1863 = vrot.lane.b32.xlu2 %v3515_v14, %s3801_s16  ;;  %s2988_s16 = scalar_lea.hbm %s2987_s29, 2 }
 0xa69   : > { %p2989_p1 = scmp.ne.s32.totalorder %s2987_s29, %s2988_s16 }
 0xa6a   : > { %v1530_v45 = vpop.xlane.xlu2 %1529 }
 0xa6b   : > { %2826 = vrcp.f32 %v1530_v45  ;;  %v1545_v58 = vand.u32 2147483648, %v1530_v45  ;;  %vm1539_vm4 = vweird.f32 %v1530_v45  ;;  %v1543_v60 = vand.u32 2147483647, %v1530_v45  ;;  %p2990_p4 = pnand %p2989_p1, %p3225_p7 }
 0xa6d   : > { %v1546_v6 = vor.u32 1.1754944e-38, %v1545_v58  ;;  %vm1544_vm11 = vcmp.eq.f32.partialorder %v1543_v60, 8.507059e+37  ;;  %p2991_p8 = pneg %p2990_p4 }
 0xa70   : > { %1980 = vrot.lane.b32.xlu2 %v3509_v9, %s3802_s19 }
 0xa71   : > { %v2827_v46 = vpop.eup %2826 }
 0xa72   : > { %v1535_v48 = vmul.f32 %v2827_v46, %v1530_v45  ;;  %vm1540_vm15 = vweird.f32 %v2827_v46  ;;  %v1705_v17 = vpop.permute.xlu2 %1704 }
 0xa73   : > { %2001 = vrot.lane.b32.xlu1 %v3515_v14, %s3802_s19  ;;  %vm1541_vm7 = vmor %vm1539_vm4, %vm1540_vm15  ;;  %v1710_v20 = vsel %vm683_vm2, %v1705_v17, 0 }
 0xa74   : > { %v1536_v49 = vsub.f32 1.0, %v1535_v48 }
 0xa76   : > { %v1537_v51 = vmul.f32 %v2827_v46, %v1536_v49 }
 0xa78   : > { %v1538_v56 = vadd.f32 %v2827_v46, %v1537_v51 }
 0xa7a   : > { %v1542_v1 = vsel %vm1541_vm7, %v2827_v46, %v1538_v56 }
 0xa7b   : > { %v1547_v10 = vsel %vm1544_vm11, %v1546_v6, %v1542_v1 }
 0xa7c   : > { %v1562_v16 = vmul.f32 %v3570_v0, %v1547_v10 }
 0xa7e   : > { %v1564_v21 = vpack.c.bf16 %v1562_v16, %v1562_v16 }
 0xa82   : > { %v1668_v24 = vpop.xlane.xlu0 %1667 }
 0xa83   : > { %vm1677_vm13 = vweird.f32 %v1668_v24  ;;  %v1681_v39 = vand.u32 2147483647, %v1668_v24 }
 0xa85   : > { %vm1682_vm15 = vcmp.eq.f32.partialorder %v1681_v39, 8.507059e+37 }
 0xa8a   : > { %v1533_v47 = vpop.xlane.xlu1 %1532 }
 0xa8b   : > { %2828 = vrcp.f32 %v1533_v47  ;;  %v1559_v53 = vand.u32 2147483648, %v1533_v47  ;;  %v1557_v9 = vand.u32 2147483647, %v1533_v47  ;;  %vm1553_vm3 = vweird.f32 %v1533_v47 }
 0xa8c   : > { %2830 = vrcp.f32 %v1668_v24 }
 0xa8d   : > { %v1560_v61 = vor.u32 1.1754944e-38, %v1559_v53  ;;  %vm1558_vm8 = vcmp.eq.f32.partialorder %v1557_v9, 8.507059e+37 }
 0xa91   : > { %v2829_v18 = vpop.eup %2828 }
 0xa92   : > { %v1549_v50 = vmul.f32 %v2829_v18, %v1533_v47  ;;  %vm1554_vm14 = vweird.f32 %v2829_v18  ;;  %v2831_v57 = vpop.eup %2830 }
 0xa93   : > { %vm1555_vm6 = vmor %vm1553_vm3, %vm1554_vm14  ;;  %v1673_v4 = vmul.f32 %v2831_v57, %v1668_v24  ;;  %vm1678_vm12 = vweird.f32 %v2831_v57 }
 0xa94   : > { %v1550_v52 = vsub.f32 1.0, %v1549_v50  ;;  %vm1679_vm14 = vmor %vm1677_vm13, %vm1678_vm12 }
 0xa95   : > { %v1726_v54 = vpop.permute.xlu0 %1725  ;;  %v1674_v12 = vsub.f32 1.0, %v1673_v4 }
 0xa96   : > { %v1551_v55 = vmul.f32 %v2829_v18, %v1550_v52  ;;  %v1731_v14 = vsel %vm683_vm2, %v1726_v54, 0 }
 0xa97   : > { %1740 = vmatpush.bf16.msrb.mxu3 %v1731_v14  ;;  %v1675_v19 = vmul.f32 %v2831_v57, %v1674_v12 }
 0xa98   : > { %v1552_v59 = vadd.f32 %v2829_v18, %v1551_v55 }
 0xa99   : > { %v1676_v22 = vadd.f32 %v2831_v57, %v1675_v19 }
 0xa9a   : > { %v1556_v62 = vsel %vm1555_vm6, %v2829_v18, %v1552_v59 }
 0xa9b   : > { %v1561_v5 = vsel %vm1558_vm8, %v1560_v61, %v1556_v62  ;;  %v1680_v25 = vsel %vm1679_vm14, %v2831_v57, %v1676_v22 }
 0xa9c   : > { %v1563_v7 = vmul.f32 %v3580_v8, %v1561_v5  ;;  %v1683_v8 = vand.u32 2147483648, %v1668_v24 }
 0xa9e   : > { %v1565_v35 = vpack.c.bf16 %v1563_v7, %v1563_v7  ;;  %v1684_v27 = vor.u32 1.1754944e-38, %v1683_v8 }
 0xaa0   : > { %2545 = vmatmul.msk.bf16.vlgmr.msra.gmra.mxu3 %vm584_vm1, %v1565_v35  ;;  %v1685_v28 = vsel %vm1682_vm15, %v1684_v27, %v1680_v25 }
 0xaa1   : > { %v1700_v29 = vmul.f32 %v3574_v11, %v1685_v28 }
 0xaa2   : > { %v1567_v3 = vpop.permute.xlu1 %1566 }
 0xaa3   : > { %v1572_v2 = vsel %vm683_vm2, %v1567_v3, 0  ;;  %v1702_v37 = vpack.c.bf16 %v1700_v29, %v1700_v29 }
 0xaa4   : > { %1581 = vmatpush.bf16.msrb.mxu2 %v1572_v2 }
 0xaa7   : > { %2544 = vmatmul.msk.bf16.vlgmr.msrb.gmra.mxu2 %vm584_vm1, %v1564_v21 }
 0xaa8   : > { %1719 = vmatpush.bf16.msra.mxu2 %v1710_v20 }
 0xaab   : > { %v1671_v0 = vpop.xlane.xlu2 %1670 }
 0xaac   : > { %2832 = vrcp.f32 %v1671_v0  ;;  %v1697_v15 = vand.u32 2147483648, %v1671_v0  ;;  %v1695_v40 = vand.u32 2147483647, %v1671_v0  ;;  %vm1691_vm4 = vweird.f32 %v1671_v0 }
 0xaae   : > { %v1698_v45 = vor.u32 1.1754944e-38, %v1697_v15  ;;  %vm1696_vm7 = vcmp.eq.f32.partialorder %v1695_v40, 8.507059e+37 }
 0xab2   : > { %v2833_v31 = vpop.eup %2832 }
 0xab3   : > { %v1687_v32 = vmul.f32 %v2833_v31, %v1671_v0  ;;  %v1806_v34 = vpop.xlane.xlu2 %1805  ;;  %vm1692_vm3 = vweird.f32 %v2833_v31 }
 0xab4   : > { %2834 = vrcp.f32 %v1806_v34  ;;  %vm1693_vm6 = vmor %vm1691_vm4, %vm1692_vm3  ;;  %v1821_v18 = vand.u32 2147483648, %v1806_v34  ;;  %v1819_v51 = vand.u32 2147483647, %v1806_v34  ;;  %vm1815_vm11 = vweird.f32 %v1806_v34 }
 0xab5   : > { %v1688_v36 = vsub.f32 1.0, %v1687_v32 }
 0xab6   : > { %v1822_v55 = vor.u32 1.1754944e-38, %v1821_v18  ;;  %vm1820_vm13 = vcmp.eq.f32.partialorder %v1819_v51, 8.507059e+37 }
 0xab7   : > { %v1689_v38 = vmul.f32 %v2833_v31, %v1688_v36  ;;  %2548 = vmatmul.msk.bf16.vlgmr.msra.gmra.mxu2 %vm584_vm1, %v1702_v37 }
 0xab9   : > { %v1690_v42 = vadd.f32 %v2833_v31, %v1689_v38 }
 0xaba   : > { %v2835_v44 = vpop.eup %2834 }
 0xabb   : > { %v1694_v46 = vsel %vm1693_vm6, %v2833_v31, %v1690_v42  ;;  %v1811_v11 = vmul.f32 %v2835_v44, %v1806_v34  ;;  %v1809_v47 = vpop.xlane.xlu2 %1808  ;;  %vm1816_vm8 = vweird.f32 %v2835_v44 }
 0xabc   : > { %v1699_v48 = vsel %vm1696_vm7, %v1698_v45, %v1694_v46  ;;  %2836 = vrcp.f32 %v1809_v47  ;;  %vm1817_vm12 = vmor %vm1815_vm11, %vm1816_vm8  ;;  %v1835_v61 = vand.u32 2147483648, %v1809_v47  ;;  %v1833_v1 = vand.u32 2147483647, %v1809_v47 }
 0xabd   : > { %v1701_v24 = vmul.f32 %v3588_v23, %v1699_v48  ;;  %v1812_v49 = vsub.f32 1.0, %v1811_v11  ;;  %vm1829_vm15 = vweird.f32 %v1809_v47 }
 0xabe   : > { %v1836_v6 = vor.u32 1.1754944e-38, %v1835_v61  ;;  %vm1834_vm4 = vcmp.eq.f32.partialorder %v1833_v1, 8.507059e+37  ;;  %v2616_v61 = vld [vmem:[%s3751_s3 + $0x10] sm:$0xff] }
 0xabf   : > { %v1813_v50 = vmul.f32 %v2835_v44, %v1812_v49  ;;  %v1703_v52 = vpack.c.bf16 %v1701_v24, %v1701_v24 }
 0xac0   : > { %v1947_v9 = vpop.xlane.xlu0 %1946 }
 0xac1   : > { %v1814_v53 = vadd.f32 %v2835_v44, %v1813_v50  ;;  %2549 = vmatmul.msk.bf16.vlgmr.msrb.gmra.mxu3 %vm584_vm1, %v1703_v52  ;;  %2838 = vrcp.f32 %v1947_v9  ;;  %v1973_v29 = vand.u32 2147483648, %v1947_v9  ;;  %vm1967_vm11 = vweird.f32 %v1947_v9 }
 0xac2   : > { %v2837_v54 = vpop.eup %2836  ;;  %v1971_v32 = vand.u32 2147483647, %v1947_v9 }
 0xac3   : > { %v1818_v14 = vsel %vm1817_vm12, %v2835_v44, %v1814_v53  ;;  %v1825_v56 = vmul.f32 %v2837_v54, %v1809_v47  ;;  %v1843_v57 = vpop.permute.xlu2 %1842  ;;  %vm1830_vm14 = vweird.f32 %v2837_v54  ;;  %v1974_v38 = vor.u32 1.1754944e-38, %v1973_v29 }
 0xac4   : > { %v1823_v58 = vsel %vm1820_vm13, %v1822_v55, %v1818_v14  ;;  %v1848_v23 = vsel %vm683_vm2, %v1843_v57, 0  ;;  %vm1831_vm3 = vmor %vm1829_vm15, %vm1830_vm14  ;;  %vm1972_vm15 = vcmp.eq.f32.partialorder %v1971_v32, 8.507059e+37 }
 0xac5   : > { %v1838_v59 = vmul.f32 %v3592_v30, %v1823_v58  ;;  %v1826_v60 = vsub.f32 1.0, %v1825_v56  ;;  %1857 = vmatpush.bf16.msrb.mxu2 %v1848_v23 }
 0xac7   : > { %v1827_v62 = vmul.f32 %v2837_v54, %v1826_v60  ;;  %v1840_v4 = vpack.c.bf16 %v1838_v59, %v1838_v59  ;;  %v2839_v7 = vpop.eup %2838  ;;  %v2617_v60 = vld [vmem:[%s3751_s3 + $0x18] sm:$0xff] }
 0xac8   : > { %v1963_v3 = vmul.f32 %v2839_v7, %v1947_v9  ;;  %vm1968_vm7 = vweird.f32 %v2839_v7  ;;  %2079 = vmatpush.bf16.msrb.mxu0 %v2617_v60 }
 0xac9   : > { %v1828_v5 = vadd.f32 %v2837_v54, %v1827_v62  ;;  %2552 = vmatmul.msk.bf16.vlgmr.msrb.gmra.mxu2 %vm584_vm1, %v1840_v4  ;;  %vm1969_vm13 = vmor %vm1967_vm11, %vm1968_vm7 }
 0xaca   : > { %v1964_v2 = vsub.f32 1.0, %v1963_v3 }
 0xacb   : > { %v1832_v10 = vsel %vm1831_vm3, %v2837_v54, %v1828_v5  ;;  %v1864_v35 = vpop.permute.xlu2 %1863 }
 0xacc   : > { %v1837_v12 = vsel %vm1834_vm4, %v1836_v6, %v1832_v10  ;;  %v1869_v30 = vsel %vm683_vm2, %v1864_v35, 0  ;;  %v1965_v39 = vmul.f32 %v2839_v7, %v1964_v2  ;;  %2080 = vmatpush.bf16.msrb.mxu0 %v2616_v61 }
 0xacd   : > { %v1839_v16 = vmul.f32 %v3596_v33, %v1837_v12  ;;  %v1944_v17 = vpop.xlane.xlu1 %1943  ;;  %1878 = vmatpush.bf16.msra.mxu3 %v1869_v30 }
 0xace   : > { %2840 = vrcp.f32 %v1944_v17  ;;  %v1959_v0 = vand.u32 2147483648, %v1944_v17  ;;  %v1957_v33 = vand.u32 2147483647, %v1944_v17  ;;  %v1966_v28 = vadd.f32 %v2839_v7, %v1965_v39 }
 0xacf   : > { %v1841_v19 = vpack.c.bf16 %v1839_v16, %v1839_v16  ;;  %vm1953_vm8 = vweird.f32 %v1944_v17 }
 0xad0   : > { %v1960_v34 = vor.u32 1.1754944e-38, %v1959_v0  ;;  %vm1958_vm14 = vcmp.eq.f32.partialorder %v1957_v33, 8.507059e+37  ;;  %v1970_v37 = vsel %vm1969_vm13, %v2839_v7, %v1966_v28 }
 0xad1   : > { %2553 = vmatmul.msk.bf16.vlgmr.msra.gmra.mxu3 %vm584_vm1, %v1841_v19  ;;  %v1975_v42 = vsel %vm1972_vm15, %v1974_v38, %v1970_v37 }
 0xad2   : > { %v1977_v45 = vmul.f32 %v3601_v41, %v1975_v42  ;;  %v2619_v42 = vld [vmem:[%s3755_s7 + $0x18] sm:$0xff] }
 0xad3   : > { %v1981_v20 = vpop.permute.xlu2 %1980  ;;  %2174 = vmatpush.bf16.msrb.mxu1 %v2619_v42 }
 0xad4   : > { %v2841_v21 = vpop.eup %2840  ;;  %v1986_v22 = vsel %vm683_vm2, %v1981_v20, 0  ;;  %v1979_v47 = vpack.c.bf16 %v1977_v45, %v1977_v45 }
 0xad5   : > { %v1949_v8 = vmul.f32 %v2841_v21, %v1944_v17  ;;  %1995 = vmatpush.bf16.msra.mxu2 %v1986_v22  ;;  %vm1954_vm6 = vweird.f32 %v2841_v21 }
 0xad6   : > { %vm1955_vm12 = vmor %vm1953_vm8, %vm1954_vm6 }
 0xad7   : > { %v1950_v25 = vsub.f32 1.0, %v1949_v8 }
 0xad9   : > { %v1951_v27 = vmul.f32 %v2841_v21, %v1950_v25 }
 0xadb   : > { %v1952_v31 = vadd.f32 %v2841_v21, %v1951_v27 }
 0xadd   : > { %v1956_v36 = vsel %vm1955_vm12, %v2841_v21, %v1952_v31  ;;  %v2761_v21 = vld [vmem:[%s3752_s4 + $0x1] ss:$0 sm:$0xff] }
 0xade   : > { %v1961_v15 = vsel %vm1958_vm14, %v1960_v34, %v1956_v36  ;;  %vm2314_vm14 = vcmask 253952  }
 0xadf   : > { %v1976_v40 = vmul.f32 %v3606_v43, %v1961_v15 }
 0xae1   : > { %v1978_v44 = vpack.c.bf16 %v1976_v40, %v1976_v40 }
 0xae3   : > { %2556 = vmatmul.msk.bf16.vlgmr.msra.gmra.mxu2 %vm584_vm1, %v1978_v44 }
 0xae5   : > { %v2002_v46 = vpop.permute.xlu1 %2001 }
 0xae6   : > { %v2007_v11 = vsel %vm683_vm2, %v2002_v46, 0  ;;  %v2618_v46 = vld [vmem:[%s3755_s7 + $0x10] sm:$0xff] }
 0xae7   : > { %2016 = vmatpush.bf16.msrb.mxu3 %v2007_v11  ;;  %2175 = vmatpush.bf16.msrb.mxu1 %v2618_v46 }
 0xaea   : > { %2557 = vmatmul.msk.bf16.vlgmr.msrb.gmra.mxu3 %vm584_vm1, %v1979_v47 }
 0xb23   : > { %v1604_v48 = vpop.f32.mrf.mxu3 }
 0xb2a   : > { %v1583_v24 = vpop.f32.mrf.mxu2 }
 0xb2b   : > { %v1606_v49 = vpop.f32.mrf.mxu3 }
 0xb32   : > { %v1585_v18 = vpop.f32.mrf.mxu2 }
 0xb3a   : > { %v1721_v50 = vpop.f32.mrf.mxu2 }
 0xb42   : > { %v1723_v43 = vpop.f32.mrf.mxu2 }
 0xb44   : > { %v1742_v51 = vpop.f32.mrf.mxu3 }
 0xb45   : > { %v2737_v52 = vpack.i.bf16 %v1742_v51, %v1721_v50 }
 0xb47   : > { %2738 = vrot.lane.b32.xlu2 %v2737_v52, %s3803_s11 }
 0xb4c   : > { %v1744_v53 = vpop.f32.mrf.mxu3  ;;  %v1859_v54 = vpop.f32.mrf.mxu2 }
 0xb54   : > { %v1861_v41 = vpop.f32.mrf.mxu2  ;;  %v1880_v55 = vpop.f32.mrf.mxu3 }
 0xb55   : > { %v2742_v9 = vpack.i.bf16 %v1880_v55, %v1859_v54 }
 0xb57   : > { %2743 = vrot.lane.b32.xlu0 %v2742_v9, %s3804_s17 }
 0xb5c   : > { %v1882_v14 = vpop.f32.mrf.mxu3 }
 0xb5d   : > { %v2762_v14 = vld [vmem:[#allocation7 + $0x1] ss:$0 sm:$0xff] }
 0xb66   : > { %v1997_v56 = vpop.f32.mrf.mxu2 }
 0xb6d   : > { %v2018_v57 = vpop.f32.mrf.mxu3 }
 0xb6e   : > { %v2747_v58 = vpack.i.bf16 %v2018_v57, %v1997_v56  ;;  %v1999_v23 = vpop.f32.mrf.mxu2 }
 0xb6f   : > { %v2763_v23 = vld [vmem:[%s3754_s6 + $0x1] ss:$0 sm:$0xff] }
 0xb70   : > { %2748 = vrot.lane.b32.xlu2 %v2747_v58, %s3805_s15  ;;  %s2992_s15 = scalar_lea.hbm %s3761_s13, 4 }
 0xb71   : > { %p2994_p9 = scmp.lt.s32.totalorder %s2992_s15, %s2988_s16 }
 0xb73   : > { %p2995_p2 = por %p2994_p9, %p2993_p11 }
 0xb75   : > { %v2020_v59 = vpop.f32.mrf.mxu3  ;;  %p2996_p10 = pnand %p2995_p2, %p2991_p8 }
 0xba1   : > { %v2739_v62 = vpop.permute.xlu2 %2738 }
 0xba2   : > { %v2741_v1 = vunpack.i.h.bf16 %v2739_v62  ;;  %v2740_v4 = vunpack.i.l.bf16 %v2739_v62 }
 0xba4   : > { %v2047_v35 = vsel %vm584_vm1, %v1604_v48, %v2741_v1  ;;  %v2046_v12 = vsel %vm584_vm1, %v1583_v24, %v2740_v4 }
 0xbc9   : > { %v2744_v5 = vpop.permute.xlu0 %2743 }
 0xbca   : > { %v2746_v6 = vunpack.i.h.bf16 %v2744_v5  ;;  %v2745_v7 = vunpack.i.l.bf16 %v2744_v5  ;;  %v2749_v10 = vpop.permute.xlu2 %2748  ;;  %v2623_v5 = vld [vmem:[%s3757_s9 + $0x38] sm:$0xff] }
 0xbcb   : > { %v2751_v30 = vunpack.i.h.bf16 %v2749_v10  ;;  %v2750_v16 = vunpack.i.l.bf16 %v2749_v10  ;;  %2221 = vmatpush.bf16.msrb.mxu2 %v2623_v5  ;;  %v2620_v10 = vld [vmem:[%s3757_s9 + $0x20] sm:$0xff] }
 0xbcc   : > { %v2048_v17 = vsel %vm1161_vm9, %v2046_v12, %v2745_v7  ;;  %v2049_v3 = vsel %vm1161_vm9, %v2047_v35, %v2746_v6  ;;  %v2622_v6 = vld [vmem:[%s3757_s9 + $0x30] sm:$0xff]  ;;  %v2621_v7 = vld [vmem:[%s3757_s9 + $0x28] sm:$0xff]  ;;  %v2764_v12 = vld [vmem:[%s3756_s8 + $0x1] ss:$0 sm:$0xff] }
 0xbcd   : > { %v2050_v19 = vsel %vm1164_vm10, %v2048_v17, %v2750_v16  ;;  %v2051_v2 = vsel %vm1164_vm10, %v2049_v3, %v2751_v30 }
 0xbce   : > { %v2052_v20 = vpack.c.bf16 %v2051_v2, %v2050_v19 }
 0xbcf   : > { %2222 = vmatpush.bf16.msrb.mxu2 %v2622_v6 }
 0xbd0   : > { %2567 = vmatmul.msk.bf16.vlgmr.msrb.gmra.mxu0 %vm559_vm0, %v2052_v20  ;;  %v2765_v20 = vld [vmem:[%s3758_s10 + $0x1] ss:$0 sm:$0xff] }
 0xbd3   : > { %2223 = vmatpush.bf16.msrb.mxu2 %v2621_v7 }
 0xbd7   : > { %2224 = vmatpush.bf16.msrb.mxu2 %v2620_v10 }
 0xc4d   : > { %v2082_v22 = vpop.f32.mrf.mxu0 }
 0xc4e   : > { %v2083_v8 = vadd.f32 %v2761_v21, %v2082_v22 }
 0xc50   : > { %v2087_v39 = vadd.f32 %v2083_v8, %v3502_v13 }
 0xc52   : > { %v2089_v25 = vsel %vm559_vm0, %v2087_v39, 0.0 }
 0xc53   : > { %2090 = vadd.xlane.f32.xlu2 %v2089_v25 }
 0xc55   : > { %v2084_v0 = vpop.f32.mrf.mxu0 }
 0xc56   : > { %v2085_v27 = vadd.f32 %v2761_v21, %v2084_v0 }
 0xc58   : > { %v2088_v33 = vadd.f32 %v2085_v27, %v3504_v63 }
 0xc5a   : > { %v2092_v28 = vsel %vm559_vm0, %v2088_v33, 0.0 }
 0xc5b   : > { %2093 = vadd.xlane.f32.xlu1 %v2092_v28 }
 0xcc6   : > { %v2091_v29 = vpop.xlane.xlu2 %2090 }
 0xcc7   : > { %v2095_v31 = vmul.f32 %v2091_v29, %v3448_v26 }
 0xcc9   : > { %v2097_v32 = vsub.f32 %v2087_v39, %v2095_v31 }
 0xccb   : > { %v2099_v34 = vmul.f32 %v2097_v32, %v2097_v32 }
 0xccd   : > { %v2101_v36 = vsel %vm559_vm0, %v2099_v34, 0.0 }
 0xcce   : > { %v2094_v37 = vpop.xlane.xlu1 %2093  ;;  %2102 = vadd.xlane.f32.xlu0 %v2101_v36 }
 0xccf   : > { %v2096_v13 = vmul.f32 %v2094_v37, %v3448_v26 }
 0xcd1   : > { %v2098_v15 = vsub.f32 %v2088_v33, %v2096_v13 }
 0xcd3   : > { %v2100_v38 = vmul.f32 %v2098_v15, %v2098_v15 }
 0xcd5   : > { %v2104_v40 = vsel %vm559_vm0, %v2100_v38, 0.0 }
 0xcd6   : > { %2105 = vadd.xlane.f32.xlu2 %v2104_v40 }
 0xd41   : > { %v2103_v63 = vpop.xlane.xlu0 %2102 }
 0xd42   : > { %v2107_v44 = vmul.f32 %v2103_v63, %v3448_v26 }
 0xd44   : > { %v2109_v45 = vadd.f32 1e-05, %v2107_v44 }
 0xd46   : > { %2842 = vrsqrt.f32 %v2109_v45  ;;  %vm2117_vm2 = vweird.f32 %v2109_v45 }
 0xd49   : > { %v2106_v11 = vpop.xlane.xlu2 %2105 }
 0xd4a   : > { %v2108_v47 = vmul.f32 %v2106_v11, %v3448_v26 }
 0xd4c   : > { %v2843_v48 = vpop.eup %2842  ;;  %v2110_v24 = vadd.f32 1e-05, %v2108_v47 }
 0xd4d   : > { %v2112_v49 = vmul.f32 %v2843_v48, %v2109_v45  ;;  %vm2118_vm1 = vweird.f32 %v2843_v48 }
 0xd4e   : > { %2844 = vrsqrt.f32 %v2110_v24  ;;  %vm2119_vm9 = vmor %vm2117_vm2, %vm2118_vm1  ;;  %vm2127_vm3 = vweird.f32 %v2110_v24 }
 0xd4f   : > { %v2113_v18 = vmul.f32 %v2843_v48, %v2112_v49 }
 0xd51   : > { %v2114_v50 = vmul.f32 0.5, %v2113_v18 }
 0xd53   : > { %v2115_v43 = vsub.f32 1.5, %v2114_v50 }
 0xd54   : > { %v2845_v51 = vpop.eup %2844 }
 0xd55   : > { %v2116_v52 = vmul.f32 %v2843_v48, %v2115_v43  ;;  %v2122_v53 = vmul.f32 %v2845_v51, %v2110_v24  ;;  %vm2128_vm10 = vweird.f32 %v2845_v51 }
 0xd56   : > { %vm2129_vm4 = vmor %vm2127_vm3, %vm2128_vm10 }
 0xd57   : > { %v2123_v54 = vmul.f32 %v2845_v51, %v2122_v53  ;;  %v2120_v41 = vsel %vm2119_vm9, %v2843_v48, %v2116_v52  ;;  %v3070_v48 = vmov 8.0   ;;  %v2766_v53 = vld [vmem:[#allocation8 + $0x1] ss:$0 sm:$0xff] }
 0xd58   : > { %v2131_v56 = vmul.f32 %v2120_v41, %v2097_v32 }
 0xd59   : > { %v2124_v55 = vmul.f32 0.5, %v2123_v54 }
 0xd5a   : > { %v2138_v59 = vmul.f32 %v2762_v14, %v2131_v56 }
 0xd5b   : > { %v2125_v9 = vsub.f32 1.5, %v2124_v55 }
 0xd5c   : > { %v2145_v62 = vadd.f32 %v2763_v23, %v2138_v59 }
 0xd5d   : > { %v2126_v57 = vmul.f32 %v2845_v51, %v2125_v9 }
 0xd5f   : > { %v2130_v58 = vsel %vm2129_vm4, %v2845_v51, %v2126_v57 }
 0xd60   : > { %v2132_v60 = vmul.f32 %v2130_v58, %v2098_v15 }
 0xd62   : > { %v2139_v61 = vmul.f32 %v2762_v14, %v2132_v60 }
 0xd64   : > { %v2146_v1 = vadd.f32 %v2763_v23, %v2139_v61 }
 0xd66   : > { %v2147_v4 = vpack.c.bf16 %v2146_v1, %v2145_v62 }
 0xd68   : > { %2578 = vmatmul.msk.bf16.vlgmr.msrb.gmra.mxu1 %vm559_vm0, %v2147_v4 }
 0xde5   : > { %v2177_v35 = vpop.f32.mrf.mxu1 }
 0xde6   : > { %v2178_v30 = vadd.f32 %v2764_v12, %v2177_v35 }
 0xde8   : > { %v2182_v3 = vmax.f32 %v2178_v30, 0.0 }
 0xded   : > { %v2179_v16 = vpop.f32.mrf.mxu1 }
 0xdee   : > { %v2180_v17 = vadd.f32 %v2764_v12, %v2179_v16 }
 0xdf0   : > { %v2183_v19 = vmax.f32 %v2180_v17, 0.0 }
 0xdf2   : > { %v2184_v2 = vpack.c.bf16 %v2183_v19, %v2182_v3 }
 0xdf4   : > { %2596 = vmatmul.msk.bf16.vlgmr.msrb.gmra.mxu2 %vm1331_vm5, %v2184_v2 }
 0xe77   : > { %v2226_v21 = vpop.f32.mrf.mxu2 }
 0xe78   : > { %v2227_v22 = vadd.f32 %v2765_v20, %v2226_v21 }
 0xe7a   : > { %v2231_v8 = vadd.f32 %v2227_v22, %v2145_v62 }
 0xe7c   : > { %v2233_v39 = vsel %vm559_vm0, %v2231_v8, 0.0 }
 0xe7d   : > { %2234 = vadd.xlane.f32.xlu2 %v2233_v39 }
 0xe7f   : > { %v2228_v25 = vpop.f32.mrf.mxu2 }
 0xe80   : > { %v2229_v0 = vadd.f32 %v2765_v20, %v2228_v25 }
 0xe82   : > { %v2232_v27 = vadd.f32 %v2229_v0, %v2146_v1 }
 0xe84   : > { %v2236_v33 = vsel %vm559_vm0, %v2232_v27, 0.0 }
 0xe85   : > { %2237 = vadd.xlane.f32.xlu1 %v2236_v33 }
 0xef0   : > { %v2235_v28 = vpop.xlane.xlu2 %2234 }
 0xef1   : > { %v2239_v29 = vmul.f32 %v2235_v28, %v3448_v26 }
 0xef3   : > { %v2241_v31 = vsub.f32 %v2231_v8, %v2239_v29 }
 0xef5   : > { %v2243_v32 = vmul.f32 %v2241_v31, %v2241_v31 }
 0xef7   : > { %v2245_v34 = vsel %vm559_vm0, %v2243_v32, 0.0 }
 0xef8   : > { %v2238_v36 = vpop.xlane.xlu1 %2237  ;;  %2246 = vadd.xlane.f32.xlu0 %v2245_v34 }
 0xef9   : > { %v2240_v37 = vmul.f32 %v2238_v36, %v3448_v26 }
 0xefb   : > { %v2242_v13 = vsub.f32 %v2232_v27, %v2240_v37 }
 0xefd   : > { %v2244_v15 = vmul.f32 %v2242_v13, %v2242_v13 }
 0xeff   : > { %v2248_v38 = vsel %vm559_vm0, %v2244_v15, 0.0 }
 0xf00   : > { %2249 = vadd.xlane.f32.xlu2 %v2248_v38 }
 0xf6b   : > { %v2247_v40 = vpop.xlane.xlu0 %2246 }
 0xf6c   : > { %v2251_v63 = vmul.f32 %v2247_v40, %v3448_v26 }
 0xf6e   : > { %v2253_v42 = vadd.f32 1e-05, %v2251_v63 }
 0xf70   : > { %2846 = vrsqrt.f32 %v2253_v42  ;;  %vm2261_vm6 = vweird.f32 %v2253_v42 }
 0xf73   : > { %v2250_v44 = vpop.xlane.xlu2 %2249 }
 0xf74   : > { %v2252_v45 = vmul.f32 %v2250_v44, %v3448_v26  ;;  %v2767_v26 = vld [vmem:[%s3760_s12 + $0x1] ss:$0 sm:$0xff] }
 0xf76   : > { %v2847_v46 = vpop.eup %2846  ;;  %v2254_v11 = vadd.f32 1e-05, %v2252_v45 }
 0xf77   : > { %v2256_v47 = vmul.f32 %v2847_v46, %v2253_v42  ;;  %vm2262_vm5 = vweird.f32 %v2847_v46 }
 0xf78   : > { %2848 = vrsqrt.f32 %v2254_v11  ;;  %vm2263_vm7 = vmor %vm2261_vm6, %vm2262_vm5  ;;  %vm2271_vm11 = vweird.f32 %v2254_v11 }
 0xf79   : > { %2850 = vrcp.f32 %v3070_v48  ;;  %v2257_v24 = vmul.f32 %v2847_v46, %v2256_v47 }
 0xf7b   : > { %v2258_v49 = vmul.f32 0.5, %v2257_v24 }
 0xf7d   : > { %v2259_v18 = vsub.f32 1.5, %v2258_v49 }
 0xf7e   : > { %v2849_v50 = vpop.eup %2848 }
 0xf7f   : > { %v2851_v43 = vpop.eup %2850  ;;  %v2260_v51 = vmul.f32 %v2847_v46, %v2259_v18  ;;  %v2266_v52 = vmul.f32 %v2849_v50, %v2254_v11  ;;  %vm2272_vm8 = vweird.f32 %v2849_v50 }
 0xf80   : > { %v2306_v55 = vmul.f32 8.0, %v2851_v43  ;;  %vm2273_vm12 = vmor %vm2271_vm11, %vm2272_vm8  ;;  %vm2310_vm13 = vweird.f32 %v2851_v43 }
 0xf81   : > { %v2264_v54 = vsel %vm2263_vm7, %v2847_v46, %v2260_v51  ;;  %v2267_v41 = vmul.f32 %v2849_v50, %v2266_v52 }
 0xf82   : > { %v2275_v9 = vmul.f32 %v2264_v54, %v2241_v31  ;;  %v2307_v58 = vsub.f32 1.0, %v2306_v55 }
 0xf83   : > { %v2268_v14 = vmul.f32 0.5, %v2267_v41 }
 0xf84   : > { %v2282_v56 = vmul.f32 %v2766_v53, %v2275_v9  ;;  %v2308_v1 = vmul.f32 %v2851_v43, %v2307_v58 }
 0xf85   : > { %v2269_v57 = vsub.f32 1.5, %v2268_v14 }
 0xf86   : > { %v2289_v23 = vadd.f32 %v2767_v26, %v2282_v56  ;;  %v2309_v10 = vadd.f32 %v2851_v43, %v2308_v1 }
 0xf87   : > { %v2270_v59 = vmul.f32 %v2849_v50, %v2269_v57 }
 0xf88   : > { %v2291_v60 = vsel %vm559_vm0, %v2289_v23, 0.0  ;;  %v2311_v3 = vsel %vm2310_vm13, %v2851_v43, %v2309_v10 }
 0xf89   : > { %v2292_v61 = vrot.slane %v2291_v60, 4  ;;  %v2274_v62 = vsel %vm2273_vm12, %v2849_v50, %v2270_v59 }
 0xf8a   : > { %v2276_v4 = vmul.f32 %v2274_v62, %v2242_v13 }
 0xf8b   : > { %v2293_v5 = vadd.f32 %v2292_v61, %v2291_v60 }
 0xf8c   : > { %v2283_v6 = vmul.f32 %v2766_v53, %v2276_v4 }
 0xf8d   : > { %v2294_v7 = vrot.slane %v2293_v5, 2 }
 0xf8e   : > { %v2290_v35 = vadd.f32 %v2767_v26, %v2283_v6 }
 0xf8f   : > { %v2295_v12 = vadd.f32 %v2294_v7, %v2293_v5 }
 0xf90   : > { %v2298_v30 = vsel %vm559_vm0, %v2290_v35, 0.0 }
 0xf91   : > { %v2296_v16 = vrot.slane %v2295_v12, 1  ;;  %v2299_v17 = vrot.slane %v2298_v30, 4 }
 0xf93   : > { %v2297_v19 = vadd.f32 %v2296_v16, %v2295_v12  ;;  %v2300_v2 = vadd.f32 %v2299_v17, %v2298_v30 }
 0xf95   : > { %v2312_v20 = vmul.f32 %v2311_v3, %v2297_v19  ;;  %v2301_v21 = vrot.slane %v2300_v2, 2 }
 0xf97   : > { %v2302_v22 = vadd.f32 %v2301_v21, %v2300_v2  ;;  %2315 = vst.msk [vmem:[%s510_s22] sm:$0x1] %vm2314_vm14, %v2312_v20 }
 0xf99   : > { %v2303_v8 = vrot.slane %v2302_v22, 1 }
 0xf9b   : > { %v2304_v39 = vadd.f32 %v2303_v8, %v2302_v22 }
 0xf9d   : > { %v2313_v25 = vmul.f32 %v2311_v3, %v2304_v39 }
 0xf9f   : > { %2316 = vst.msk [vmem:[%s510_s22 + $0x1] sm:$0x1] %vm2314_vm14, %v2313_v25 }
 0xfa0   : > { %2999 = shalt.err (!%p2996_p10)
}
 0xfa1   : > { %s3071_s30 = smov 1  }
 0xfa2   : > { %2638 = dma.vmem_to_hbm [thread:$0]  (%p3225_p7), %s2330_s20, 32, %s2332_s21, %s2318_s5, %s3804_s17, %s3804_s17, %s3071_s30  }
 0xfa3 PF: > { %s3806_s22 = sld [smem:[#allocation15_spill]]  ;;  %p3808_p12 = scmp.ge.s32.totalorder %s3046_s28, 2 }
 0xfa5   : > { %p2655_p13 = pnand %p3808_p12, %p3177_p6 }
 0xfa7   : > { %p2656_p0 = pneg %p2655_p13 }
 0xfa9   : > { %s2346_s27 = sand.u32 1, %s3806_s22  }
 0xfaa   : > { %s2347_s24 = scalar_lea.sflag [#allocation4], %s2346_s27 }
 0xfab   : > { %3029 = dma.done.wait (%p2656_p0), %s2347_s24, 32  }
 0xfac   : > { %3031 = vsyncadd (%p2656_p0), %s2347_s24, 4294967264  ;;  %s3809_s29 = sld [smem:[#allocation16_spill]]  ;;  %p28_p3 = scmp.ge.s32.totalorder %s3209_s18, 4  }
 0xfad   : > { %s3810_s27 = sld [smem:[#allocation18_spill]]  ;;  %s3811_s25 = smov %s3038_s26 }
 0xfae   : > { %s3813_s28 = smov %s3209_s18  ;;  %30 = sbr.rel (!%p28_p3) target bundleno = 11 (0xb), region = 141 }
 0xfb2   : > { %s3812_s26 = smov %s3809_s29 }
 0xfb3   :  { %2353 = vsyncpa [#allocation3], 1 }
 0xfb4   :  { %2355 = vsyncpa [#allocation3 + $0x1], 1 }
 0xfb5   :  { %2356 = vsyncpa [#allocation6], 1 }
 0xfb6   :  { %2357 = vsyncpa [#allocation9], 1 }
 0xfb7   :  { %2358 = vsyncpa [#allocation4], 1 }
 0xfb8   :  { %2360 = vsyncpa [#allocation4 + $0x1], 1 }

</bundles_post_ra>
